<compile_context>
chip_gen: v5e
topology: v5e:2x2
jax: 0.10.0
libtpu: 0.0.40
codegen_flags: <defaults>
</compile_context>

<pallas_src>
import jax
import jax.numpy as jnp
from jax.experimental import pallas as pl
from jax.experimental.pallas import tpu as pltpu

TB = 128  # batch tile (sublane-aligned; ~0.6 MB weights + tiles << VMEM on v5e/v6e/v7x)


def a2c_kernel(x_ref,
               w1_ref, b1_ref,            # fused layer-1 (policy | value): [8,256], [1,256]
               pw2_ref, pb2_ref, pw3_ref, pb3_ref,
               vw2_ref, vb2_ref, vw3_ref, vb3_ref,
               w4_ref, b4_ref,            # fused, lane-padded layer-4: [256,128], [1,128]
               out_ref):
    x = x_ref[...]                                                     # [TB, 8] bf16

    # Fused layer 1 for both heads: cols 0:128 -> policy, 128:256 -> value.
    h1 = jnp.dot(x, w1_ref[...], preferred_element_type=jnp.float32) + b1_ref[...]
    h1 = jnp.maximum(h1, 0.0)
    h1p = h1[:, :128].astype(jnp.bfloat16)
    h1v = h1[:, 128:].astype(jnp.bfloat16)

    def layer(h, w_ref, b_ref):
        z = jnp.dot(h, w_ref[...], preferred_element_type=jnp.float32) + b_ref[...]
        return jnp.maximum(z, 0.0).astype(jnp.bfloat16)

    h3p = layer(layer(h1p, pw2_ref, pb2_ref), pw3_ref, pb3_ref)        # [TB, 128] bf16
    h3v = layer(layer(h1v, vw2_ref, vb2_ref), vw3_ref, vb3_ref)        # [TB, 128] bf16

    # Fused final layer (block-diagonal, zero-padded to 128 lanes):
    #   z[:, 0:4] = policy logits, z[:, 4] = value, z[:, 5:] = 0.
    w4 = w4_ref[...]
    z = (jnp.dot(h3p, w4[:128, :], preferred_element_type=jnp.float32)
         + jnp.dot(h3v, w4[128:, :], preferred_element_type=jnp.float32)
         + b4_ref[...])                                                # [TB, 128] f32

    # Masked softmax over the 4 policy lanes only (all math in f32).
    lane = jax.lax.broadcasted_iota(jnp.int32, z.shape, dimension=1)
    is_policy = lane < 4
    logits = jnp.where(is_policy, z, jnp.float32(-jnp.inf))
    m = jnp.max(logits, axis=-1, keepdims=True)
    e = jnp.exp(logits - m)                    # masked lanes -> exp(-inf) = 0
    s = jnp.sum(e, axis=-1, keepdims=True)
    r = pl.reciprocal(s, approx=True)
    r = r * (2.0 - s * r)                      # one Newton step -> ~f32 accuracy

    # Lane-dense [TB, 128] store: policy probs in lanes 0:4, value in lane 4, zeros after.
    out_ref[...] = jnp.where(is_policy, e * r, z)


def a2c_forward(state, params):
    """state: [B, 8] f32. params: flat tuple of 16 f32 arrays (policy then value)."""
    (pw1, pb1, pw2, pb2, pw3, pb3, pw4, pb4,
     vw1, vb1, vw2, vb2, vw3, vb3, vw4, vb4) = params

    B = state.shape[0]
    Bp = ((B + TB - 1) // TB) * TB
    x = state.astype(jnp.bfloat16)
    if Bp != B:
        x = jnp.pad(x, ((0, Bp - B), (0, 0)))

    # ---- host-side packing (would normally be done once, outside the step loop) ----
    # Fused layer-1 weights for both heads.
    w1 = jnp.concatenate([pw1, vw1], axis=1).astype(jnp.bfloat16)      # [8, 256]
    b1 = jnp.concatenate([pb1, vb1], axis=1)                           # [1, 256] f32
    # Fused, lane-padded final layer: block-diagonal [256, 128].
    w4 = jnp.zeros((256, 128), jnp.float32)
    w4 = w4.at[:128, :4].set(pw4).at[128:, 4:5].set(vw4)
    w4 = w4.astype(jnp.bfloat16)
    b4 = jnp.zeros((1, 128), jnp.float32)
    b4 = b4.at[:, :4].set(pb4).at[:, 4:5].set(vb4)

    weight_args = (w1, b1,
                   pw2.astype(jnp.bfloat16), pb2, pw3.astype(jnp.bfloat16), pb3,
                   vw2.astype(jnp.bfloat16), vb2, vw3.astype(jnp.bfloat16), vb3,
                   w4, b4)
    # Constant index_map -> weights fetched once and kept resident in VMEM.
    weight_specs = [pl.BlockSpec(w.shape, lambda i: (0, 0)) for w in weight_args]

    out = pl.pallas_call(
        a2c_kernel,
        out_shape=jax.ShapeDtypeStruct((Bp, 128), jnp.float32),
        grid=(Bp // TB,),
        in_specs=[pl.BlockSpec((TB, 8), lambda i: (i, 0))] + weight_specs,
        out_specs=pl.BlockSpec((TB, 128), lambda i: (i, 0)),
        compiler_params=pltpu.CompilerParams(
            dimension_semantics=("parallel",)),
    )(x, *weight_args)

    policy = out[:B, :4]
    value = out[:B, 4:5]
    return policy, value


def init_linear(key, fan_in, fan_out):
    """Deterministic init mirroring nn.Linear's U(-1/sqrt(fan_in), +1/sqrt(fan_in))."""
    kw, kb = jax.random.split(key)
    bound = 1.0 / jnp.sqrt(fan_in)
    w = jax.random.uniform(kw, (fan_in, fan_out), jnp.float32, -bound, bound)
    b = jax.random.uniform(kb, (1, fan_out), jnp.float32, -bound, bound)
    return w, b


def init_params(key):
    dims = [(8, 128), (128, 256), (256, 128)]
    keys = jax.random.split(key, 8)
    p = []
    for i, (fi, fo) in enumerate(dims + [(128, 4)]):   # policy: 8->128->256->128->4
        w, b = init_linear(keys[i], fi, fo)
        p += [w, b]
    v = []
    for i, (fi, fo) in enumerate(dims + [(128, 1)]):   # value: 8->128->256->128->1
        w, b = init_linear(keys[4 + i], fi, fo)
        v += [w, b]
    return tuple(p + v)


def reference_forward(state, params):
    (pw1, pb1, pw2, pb2, pw3, pb3, pw4, pb4,
     vw1, vb1, vw2, vb2, vw3, vb3, vw4, vb4) = params

    def mlp(x, w1, b1, w2, b2, w3, b3, w4, b4):
        h = jnp.maximum(x @ w1 + b1, 0.0)
        h = jnp.maximum(h @ w2 + b2, 0.0)
        h = jnp.maximum(h @ w3 + b3, 0.0)
        return h @ w4 + b4

    logits = mlp(state, pw1, pb1, pw2, pb2, pw3, pb3, pw4, pb4)
    policy = jax.nn.softmax(logits, axis=-1)
    value = mlp(state, vw1, vb1, vw2, vb2, vw3, vb3, vw4, vb4)
    return policy, value


if __name__ == "__main__":
    key = jax.random.PRNGKey(0)
    k_state, k_params = jax.random.split(key)

    # Batch >= 128 so the weight DMA is amortized and the MXU sublanes are filled;
    # B=256 gives a 2-step parallel batch grid (2 TCs on v7x).
    B = 256
    state = jax.random.normal(k_state, (B, 8), dtype=jnp.float32)
    params = init_params(k_params)

    fwd = jax.jit(a2c_forward)
    policy, value = fwd(state, params)
    jax.block_until_ready((policy, value))

    # Sanity check against plain-JAX f32 reference (bf16 MXU inputs -> loosened tol).
    ref_policy, ref_value = reference_forward(state, params)
    assert policy.shape == (B, 4) and value.shape == (B, 1)
    assert jnp.allclose(policy, ref_policy, atol=3e-2, rtol=3e-2)
    assert jnp.allclose(value, ref_value, atol=5e-2, rtol=5e-2)
    assert jnp.allclose(jnp.sum(policy, axis=-1), 1.0, atol=1e-4)

    # TODO(synk): for repeated per-step inference with fixed params, hoist the
    # bf16 weight packing out of the step loop (or use cross-call weight prefetch).

    print("KERNEL_OK")
</pallas_src>

<mosaic_0001>
module attributes {stable_mosaic.version = 11 : i64} {
  func.func @a2c_kernel(%arg0: i32, %arg1: memref<128x8xbf16, #tpu.memory_space<vmem>>, %arg2: memref<8x256xbf16, #tpu.memory_space<vmem>>, %arg3: memref<1x256xf32, #tpu.memory_space<vmem>>, %arg4: memref<128x256xbf16, #tpu.memory_space<vmem>>, %arg5: memref<1x256xf32, #tpu.memory_space<vmem>>, %arg6: memref<256x128xbf16, #tpu.memory_space<vmem>>, %arg7: memref<1x128xf32, #tpu.memory_space<vmem>>, %arg8: memref<128x256xbf16, #tpu.memory_space<vmem>>, %arg9: memref<1x256xf32, #tpu.memory_space<vmem>>, %arg10: memref<256x128xbf16, #tpu.memory_space<vmem>>, %arg11: memref<1x128xf32, #tpu.memory_space<vmem>>, %arg12: memref<256x128xbf16, #tpu.memory_space<vmem>>, %arg13: memref<1x128xf32, #tpu.memory_space<vmem>>, %arg14: memref<128x128xf32, #tpu.memory_space<vmem>>) attributes {dimension_semantics = [#tpu.dimension_semantics<parallel>], iteration_bounds = array<i64: 2>, scalar_prefetch = 0 : i64, scratch_operands = 0 : i64, tpu.core_type = #tpu.core_type<tc>, window_params = [{transform_indices = @transform_0, window_bounds = array<i64: 128, 8>}, {pipeline_mode = #tpu.pipeline_mode<synchronous>, transform_indices = @transform_1, window_bounds = array<i64: 8, 256>}, {pipeline_mode = #tpu.pipeline_mode<synchronous>, transform_indices = @transform_2, window_bounds = array<i64: 1, 256>}, {pipeline_mode = #tpu.pipeline_mode<synchronous>, transform_indices = @transform_3, window_bounds = array<i64: 128, 256>}, {pipeline_mode = #tpu.pipeline_mode<synchronous>, transform_indices = @transform_4, window_bounds = array<i64: 1, 256>}, {pipeline_mode = #tpu.pipeline_mode<synchronous>, transform_indices = @transform_5, window_bounds = array<i64: 256, 128>}, {pipeline_mode = #tpu.pipeline_mode<synchronous>, transform_indices = @transform_6, window_bounds = array<i64: 1, 128>}, {pipeline_mode = #tpu.pipeline_mode<synchronous>, transform_indices = @transform_7, window_bounds = array<i64: 128, 256>}, {pipeline_mode = #tpu.pipeline_mode<synchronous>, transform_indices = @transform_8, window_bounds = array<i64: 1, 256>}, {pipeline_mode = #tpu.pipeline_mode<synchronous>, transform_indices = @transform_9, window_bounds = array<i64: 256, 128>}, {pipeline_mode = #tpu.pipeline_mode<synchronous>, transform_indices = @transform_10, window_bounds = array<i64: 1, 128>}, {pipeline_mode = #tpu.pipeline_mode<synchronous>, transform_indices = @transform_11, window_bounds = array<i64: 256, 128>}, {pipeline_mode = #tpu.pipeline_mode<synchronous>, transform_indices = @transform_12, window_bounds = array<i64: 1, 128>}, {transform_indices = @transform_13, window_bounds = array<i64: 128, 128>}]} {
    %c0 = arith.constant 0 : index
    %c0_0 = arith.constant 0 : index
    %0 = vector.load %arg1[%c0, %c0_0] : memref<128x8xbf16, #tpu.memory_space<vmem>>, vector<128x8xbf16>
    %c0_1 = arith.constant 0 : index
    %c0_2 = arith.constant 0 : index
    %1 = vector.load %arg2[%c0_1, %c0_2] : memref<8x256xbf16, #tpu.memory_space<vmem>>, vector<8x256xbf16>
    %cst = arith.constant dense<0.000000e+00> : vector<128x256xf32>
    %2 = tpu.matmul %0, %1, %cst {dimension_numbers = #tpu.dot_dimension_numbers<[1], [0], [0], [1], [0, 0, 1, 1], [], []>} : vector<128x8xbf16>, vector<8x256xbf16>, vector<128x256xf32> -> vector<128x256xf32>
    %c0_3 = arith.constant 0 : index
    %c0_4 = arith.constant 0 : index
    %3 = vector.load %arg3[%c0_3, %c0_4] : memref<1x256xf32, #tpu.memory_space<vmem>>, vector<1x256xf32>
    %4 = vector.broadcast %3 : vector<1x256xf32> to vector<128x256xf32>
    %5 = arith.addf %2, %4 : vector<128x256xf32>
    %cst_5 = arith.constant 0.000000e+00 : f32
    %6 = vector.broadcast %cst_5 : f32 to vector<128x256xf32>
    %7 = arith.maximumf %5, %6 : vector<128x256xf32>
    %8 = vector.extract_strided_slice %7 {offsets = [0, 0], sizes = [128, 128], strides = [1, 1]} : vector<128x256xf32> to vector<128x128xf32>
    %9 = arith.truncf %8 : vector<128x128xf32> to vector<128x128xbf16>
    %10 = vector.extract_strided_slice %7 {offsets = [0, 128], sizes = [128, 128], strides = [1, 1]} : vector<128x256xf32> to vector<128x128xf32>
    %11 = arith.truncf %10 : vector<128x128xf32> to vector<128x128xbf16>
    %c0_6 = arith.constant 0 : index
    %c0_7 = arith.constant 0 : index
    %12 = vector.load %arg4[%c0_6, %c0_7] : memref<128x256xbf16, #tpu.memory_space<vmem>>, vector<128x256xbf16>
    %cst_8 = arith.constant dense<0.000000e+00> : vector<128x256xf32>
    %13 = tpu.matmul %9, %12, %cst_8 {dimension_numbers = #tpu.dot_dimension_numbers<[1], [0], [0], [1], [0, 0, 1, 1], [], []>} : vector<128x128xbf16>, vector<128x256xbf16>, vector<128x256xf32> -> vector<128x256xf32>
    %c0_9 = arith.constant 0 : index
    %c0_10 = arith.constant 0 : index
    %14 = vector.load %arg5[%c0_9, %c0_10] : memref<1x256xf32, #tpu.memory_space<vmem>>, vector<1x256xf32>
    %15 = vector.broadcast %14 : vector<1x256xf32> to vector<128x256xf32>
    %16 = arith.addf %13, %15 : vector<128x256xf32>
    %cst_11 = arith.constant 0.000000e+00 : f32
    %17 = vector.broadcast %cst_11 : f32 to vector<128x256xf32>
    %18 = arith.maximumf %16, %17 : vector<128x256xf32>
    %19 = arith.truncf %18 : vector<128x256xf32> to vector<128x256xbf16>
    %c0_12 = arith.constant 0 : index
    %c0_13 = arith.constant 0 : index
    %20 = vector.load %arg6[%c0_12, %c0_13] : memref<256x128xbf16, #tpu.memory_space<vmem>>, vector<256x128xbf16>
    %cst_14 = arith.constant dense<0.000000e+00> : vector<128x128xf32>
    %21 = tpu.matmul %19, %20, %cst_14 {dimension_numbers = #tpu.dot_dimension_numbers<[1], [0], [0], [1], [0, 0, 1, 1], [], []>} : vector<128x256xbf16>, vector<256x128xbf16>, vector<128x128xf32> -> vector<128x128xf32>
    %c0_15 = arith.constant 0 : index
    %c0_16 = arith.constant 0 : index
    %22 = vector.load %arg7[%c0_15, %c0_16] : memref<1x128xf32, #tpu.memory_space<vmem>>, vector<1x128xf32>
    %23 = vector.broadcast %22 : vector<1x128xf32> to vector<128x128xf32>
    %24 = arith.addf %21, %23 : vector<128x128xf32>
    %cst_17 = arith.constant 0.000000e+00 : f32
    %25 = vector.broadcast %cst_17 : f32 to vector<128x128xf32>
    %26 = arith.maximumf %24, %25 : vector<128x128xf32>
    %27 = arith.truncf %26 : vector<128x128xf32> to vector<128x128xbf16>
    %c0_18 = arith.constant 0 : index
    %c0_19 = arith.constant 0 : index
    %28 = vector.load %arg8[%c0_18, %c0_19] : memref<128x256xbf16, #tpu.memory_space<vmem>>, vector<128x256xbf16>
    %cst_20 = arith.constant dense<0.000000e+00> : vector<128x256xf32>
    %29 = tpu.matmul %11, %28, %cst_20 {dimension_numbers = #tpu.dot_dimension_numbers<[1], [0], [0], [1], [0, 0, 1, 1], [], []>} : vector<128x128xbf16>, vector<128x256xbf16>, vector<128x256xf32> -> vector<128x256xf32>
    %c0_21 = arith.constant 0 : index
    %c0_22 = arith.constant 0 : index
    %30 = vector.load %arg9[%c0_21, %c0_22] : memref<1x256xf32, #tpu.memory_space<vmem>>, vector<1x256xf32>
    %31 = vector.broadcast %30 : vector<1x256xf32> to vector<128x256xf32>
    %32 = arith.addf %29, %31 : vector<128x256xf32>
    %cst_23 = arith.constant 0.000000e+00 : f32
    %33 = vector.broadcast %cst_23 : f32 to vector<128x256xf32>
    %34 = arith.maximumf %32, %33 : vector<128x256xf32>
    %35 = arith.truncf %34 : vector<128x256xf32> to vector<128x256xbf16>
    %c0_24 = arith.constant 0 : index
    %c0_25 = arith.constant 0 : index
    %36 = vector.load %arg10[%c0_24, %c0_25] : memref<256x128xbf16, #tpu.memory_space<vmem>>, vector<256x128xbf16>
    %cst_26 = arith.constant dense<0.000000e+00> : vector<128x128xf32>
    %37 = tpu.matmul %35, %36, %cst_26 {dimension_numbers = #tpu.dot_dimension_numbers<[1], [0], [0], [1], [0, 0, 1, 1], [], []>} : vector<128x256xbf16>, vector<256x128xbf16>, vector<128x128xf32> -> vector<128x128xf32>
    %c0_27 = arith.constant 0 : index
    %c0_28 = arith.constant 0 : index
    %38 = vector.load %arg11[%c0_27, %c0_28] : memref<1x128xf32, #tpu.memory_space<vmem>>, vector<1x128xf32>
    %39 = vector.broadcast %38 : vector<1x128xf32> to vector<128x128xf32>
    %40 = arith.addf %37, %39 : vector<128x128xf32>
    %cst_29 = arith.constant 0.000000e+00 : f32
    %41 = vector.broadcast %cst_29 : f32 to vector<128x128xf32>
    %42 = arith.maximumf %40, %41 : vector<128x128xf32>
    %43 = arith.truncf %42 : vector<128x128xf32> to vector<128x128xbf16>
    %c0_30 = arith.constant 0 : index
    %c0_31 = arith.constant 0 : index
    %44 = vector.load %arg12[%c0_30, %c0_31] : memref<256x128xbf16, #tpu.memory_space<vmem>>, vector<256x128xbf16>
    %45 = vector.extract_strided_slice %44 {offsets = [0, 0], sizes = [128, 128], strides = [1, 1]} : vector<256x128xbf16> to vector<128x128xbf16>
    %cst_32 = arith.constant dense<0.000000e+00> : vector<128x128xf32>
    %46 = tpu.matmul %27, %45, %cst_32 {dimension_numbers = #tpu.dot_dimension_numbers<[1], [0], [0], [1], [0, 0, 1, 1], [], []>} : vector<128x128xbf16>, vector<128x128xbf16>, vector<128x128xf32> -> vector<128x128xf32>
    %47 = vector.extract_strided_slice %44 {offsets = [128, 0], sizes = [128, 128], strides = [1, 1]} : vector<256x128xbf16> to vector<128x128xbf16>
    %cst_33 = arith.constant dense<0.000000e+00> : vector<128x128xf32>
    %48 = tpu.matmul %43, %47, %cst_33 {dimension_numbers = #tpu.dot_dimension_numbers<[1], [0], [0], [1], [0, 0, 1, 1], [], []>} : vector<128x128xbf16>, vector<128x128xbf16>, vector<128x128xf32> -> vector<128x128xf32>
    %49 = arith.addf %46, %48 : vector<128x128xf32>
    %c0_34 = arith.constant 0 : index
    %c0_35 = arith.constant 0 : index
    %50 = vector.load %arg13[%c0_34, %c0_35] : memref<1x128xf32, #tpu.memory_space<vmem>>, vector<1x128xf32>
    %51 = vector.broadcast %50 : vector<1x128xf32> to vector<128x128xf32>
    %52 = arith.addf %49, %51 : vector<128x128xf32>
    %53 = tpu.iota {dimensions = array<i32: 1>} : vector<128x128xi32>
    %c4_i32 = arith.constant 4 : i32
    %54 = vector.broadcast %c4_i32 : i32 to vector<128x128xi32>
    %55 = arith.cmpi slt, %53, %54 : vector<128x128xi32>
    %cst_36 = arith.constant 0xFF800000 : f32
    %56 = vector.broadcast %cst_36 : f32 to vector<128x128xf32>
    %57 = arith.select %55, %52, %56 : vector<128x128xi1>, vector<128x128xf32>
    %cst_37 = arith.constant dense<0xFF800000> : vector<128xf32>
    %58 = vector.multi_reduction <maximumf>, %57, %cst_37 [1] : vector<128x128xf32> to vector<128xf32>
    %59 = vector.shape_cast %58 : vector<128xf32> to vector<128x1xf32>
    %60 = vector.broadcast %59 : vector<128x1xf32> to vector<128x128xf32>
    %61 = arith.subf %57, %60 : vector<128x128xf32>
    %62 = math.exp %61 : vector<128x128xf32>
    %cst_38 = arith.constant dense<0.000000e+00> : vector<128xf32>
    %63 = vector.multi_reduction <add>, %62, %cst_38 [1] : vector<128x128xf32> to vector<128xf32>
    %64 = vector.shape_cast %63 : vector<128xf32> to vector<128x1xf32>
    %65 = tpu.reciprocal %64 {approx = true} : vector<128x1xf32> -> vector<128x1xf32>
    %66 = arith.mulf %64, %65 : vector<128x1xf32>
    %cst_39 = arith.constant 2.000000e+00 : f32
    %67 = vector.broadcast %cst_39 : f32 to vector<128x1xf32>
    %68 = arith.subf %67, %66 : vector<128x1xf32>
    %69 = arith.mulf %65, %68 : vector<128x1xf32>
    %70 = vector.broadcast %69 : vector<128x1xf32> to vector<128x128xf32>
    %71 = arith.mulf %62, %70 : vector<128x128xf32>
    %72 = arith.select %55, %71, %52 : vector<128x128xi1>, vector<128x128xf32>
    %c0_40 = arith.constant 0 : index
    %c0_41 = arith.constant 0 : index
    %73 = vector.load %arg14[%c0_40, %c0_41] : memref<128x128xf32, #tpu.memory_space<vmem>>, vector<128x128xf32>
    tpu.vector_store %arg14[%c0_40, %c0_41], %72 {strides = array<i32>} : memref<128x128xf32, #tpu.memory_space<vmem>>, vector<128x128xf32>,
    return
  }
  func.func @transform_0(%arg0: i32) -> (i32, i32) {
    %c0_i32 = arith.constant 0 : i32
    %c0_i32_0 = arith.constant 0 : i32
    return %arg0, %c0_i32 : i32, i32
  }
  func.func @transform_1(%arg0: i32) -> (i32, i32) {
    %c0_i32 = arith.constant 0 : i32
    %c0_i32_0 = arith.constant 0 : i32
    %c0_i32_1 = arith.constant 0 : i32
    return %c0_i32, %c0_i32_0 : i32, i32
  }
  func.func @transform_2(%arg0: i32) -> (i32, i32) {
    %c0_i32 = arith.constant 0 : i32
    %c0_i32_0 = arith.constant 0 : i32
    %c0_i32_1 = arith.constant 0 : i32
    return %c0_i32, %c0_i32_0 : i32, i32
  }
  func.func @transform_3(%arg0: i32) -> (i32, i32) {
    %c0_i32 = arith.constant 0 : i32
    %c0_i32_0 = arith.constant 0 : i32
    %c0_i32_1 = arith.constant 0 : i32
    return %c0_i32, %c0_i32_0 : i32, i32
  }
  func.func @transform_4(%arg0: i32) -> (i32, i32) {
    %c0_i32 = arith.constant 0 : i32
    %c0_i32_0 = arith.constant 0 : i32
    %c0_i32_1 = arith.constant 0 : i32
    return %c0_i32, %c0_i32_0 : i32, i32
  }
  func.func @transform_5(%arg0: i32) -> (i32, i32) {
    %c0_i32 = arith.constant 0 : i32
    %c0_i32_0 = arith.constant 0 : i32
    %c0_i32_1 = arith.constant 0 : i32
    return %c0_i32, %c0_i32_0 : i32, i32
  }
  func.func @transform_6(%arg0: i32) -> (i32, i32) {
    %c0_i32 = arith.constant 0 : i32
    %c0_i32_0 = arith.constant 0 : i32
    %c0_i32_1 = arith.constant 0 : i32
    return %c0_i32, %c0_i32_0 : i32, i32
  }
  func.func @transform_7(%arg0: i32) -> (i32, i32) {
    %c0_i32 = arith.constant 0 : i32
    %c0_i32_0 = arith.constant 0 : i32
    %c0_i32_1 = arith.constant 0 : i32
    return %c0_i32, %c0_i32_0 : i32, i32
  }
  func.func @transform_8(%arg0: i32) -> (i32, i32) {
    %c0_i32 = arith.constant 0 : i32
    %c0_i32_0 = arith.constant 0 : i32
    %c0_i32_1 = arith.constant 0 : i32
    return %c0_i32, %c0_i32_0 : i32, i32
  }
  func.func @transform_9(%arg0: i32) -> (i32, i32) {
    %c0_i32 = arith.constant 0 : i32
    %c0_i32_0 = arith.constant 0 : i32
    %c0_i32_1 = arith.constant 0 : i32
    return %c0_i32, %c0_i32_0 : i32, i32
  }
  func.func @transform_10(%arg0: i32) -> (i32, i32) {
    %c0_i32 = arith.constant 0 : i32
    %c0_i32_0 = arith.constant 0 : i32
    %c0_i32_1 = arith.constant 0 : i32
    return %c0_i32, %c0_i32_0 : i32, i32
  }
  func.func @transform_11(%arg0: i32) -> (i32, i32) {
    %c0_i32 = arith.constant 0 : i32
    %c0_i32_0 = arith.constant 0 : i32
    %c0_i32_1 = arith.constant 0 : i32
    return %c0_i32, %c0_i32_0 : i32, i32
  }
  func.func @transform_12(%arg0: i32) -> (i32, i32) {
    %c0_i32 = arith.constant 0 : i32
    %c0_i32_0 = arith.constant 0 : i32
    %c0_i32_1 = arith.constant 0 : i32
    return %c0_i32, %c0_i32_0 : i32, i32
  }
  func.func @transform_13(%arg0: i32) -> (i32, i32) {
    %c0_i32 = arith.constant 0 : i32
    %c0_i32_0 = arith.constant 0 : i32
    return %arg0, %c0_i32 : i32, i32
  }
}

</mosaic_0001>

<bundles_post_ra>
// kernel: a2c_forward.1
= control target key start
LH: loop header
LB: loop body
LE: loop exit
PB: predicated region body
PF: predicated region fallthrough
CT: control target
= control target key end

     0   :  { %s2860_s25 = smov 0   ;;  %s3737_s0 = inlined_call_operand.vmem [shape: bf16[256,8], index: 0, kind: input, shape index: {}]   ;;  %s3738_s1 = inlined_call_operand.vmem [shape: bf16[8,256], index: 1, kind: input, shape index: {}]   ;;  %s3739_s2 = inlined_call_operand.vmem [shape: f32[1,256], index: 2, kind: input, shape index: {}]   ;;  %s3740_s3 = inlined_call_operand.vmem [shape: bf16[128,256], index: 3, kind: input, shape index: {}]   ;;  %s3741_s4 = inlined_call_operand.vmem [shape: f32[1,256], index: 4, kind: input, shape index: {}]   ;;  %s3742_s5 = inlined_call_operand.vmem [shape: bf16[256,128], index: 5, kind: input, shape index: {}]   ;;  %s3743_s6 = inlined_call_operand.vmem [shape: f32[1,128], index: 6, kind: input, shape index: {}]   ;;  %s3744_s7 = inlined_call_operand.vmem [shape: bf16[128,256], index: 7, kind: input, shape index: {}]   ;;  %s3745_s8 = inlined_call_operand.vmem [shape: f32[1,256], index: 8, kind: input, shape index: {}]   ;;  %s3746_s9 = inlined_call_operand.vmem [shape: bf16[256,128], index: 9, kind: input, shape index: {}]   ;;  %s3747_s10 = inlined_call_operand.vmem [shape: f32[1,128], index: 10, kind: input, shape index: {}]   ;;  %s3748_s11 = inlined_call_operand.vmem [shape: bf16[256,128], index: 11, kind: input, shape index: {}]   ;;  %s3749_s12 = inlined_call_operand.vmem [shape: f32[1,128], index: 12, kind: input, shape index: {}]   ;;  %s3750_s13 = inlined_call_operand.vmem [shape: f32[256,128], index: 13, kind: output, shape index: {}]  }
   0x1 LB: > { %s2240_s26 = sadd.s32 4294967295, %s2788_s25   ;;  %p2244_p0 = scmp.ge.s32.totalorder %s2788_s25, 1  ;;  %s2788_s25 = sphi %s2860_s25, %s23_s25  }
   0x2   : > { %p388_p1 = scmp.lt.s32.totalorder %s2788_s25, 3 }
   0x4   : > { %p389_p2 = pnand %p2244_p0, %p388_p1 }
   0x5   : > { %s2245_s29 = sshll.u32 (!%p389_p2), %s2240_s26, 4 }
   0x6   : > { %392 = sbr.rel (%p389_p2) target bundleno = 1093 (0x445), region = 72  ;;  %p433_p3 = scmp.lt.s32.totalorder (!%p389_p2), %s2245_s29, 31 }
   0xb   : > { %v461_v0 = vld [vmem:[%s3738_s1] sm:$0xff]  ;;  %vm538_vm0 = vcmask 1043456   ;;  %s3752_s29 = smov (!%p433_p3, %s2245_s29), 31  ;;  %vm513_vm1 = vcmask 64512   ;;  %v2355_v9 = vld [vmem:[%s3740_s3 + $0x70] sm:$0xf] }
   0xc   : > { %v509_v1 = vunpack.c.l.b16 %v461_v0  ;;  %s2246_s30 = sshll.u32 %s3752_s29, 2  ;;  %v2642_v10 = vld [vmem:[%s3740_s3 + $0x74] sm:$0xf0]  ;;  %v2641_v11 = vld [vmem:[%s3740_s3 + $0x74] sm:$0xf]  ;;  %v510_v22 = vunpack.c.h.b16 %v461_v0 }
   0xd   : > { %s2878_s16 = scalar_lea.vmem %s3737_s0, %s2246_s30  ;;  %v2356_v12 = vor.u32 %v2642_v10, %v2355_v9  ;;  %v2357_v13 = vld [vmem:[%s3740_s3 + $0x78] sm:$0xf0]  ;;  %v2347_v16 = vld [vmem:[%s3740_s3 + $0x60] sm:$0xf]  ;;  %v2640_v17 = vld [vmem:[%s3740_s3 + $0x64] sm:$0xf0] }
   0xe   : > { %v511_v2 = vpack.c.b16 %v509_v1, %v509_v1  ;;  %v2619_v4 = vld [vmem:[%s2878_s16] sm:$0xff]  ;;  %v2883_v5 = vld [vmem:[%s2878_s16 + $0x8] sm:$0xff]  ;;  %v2888_v6 = vld [vmem:[%s2878_s16 + $0x10] sm:$0xff]  ;;  %v2360_v14 = vor.u32 %v2641_v11, %v2357_v13  ;;  %v2348_v19 = vor.u32 %v2640_v17, %v2347_v16  ;;  %v512_v28 = vpack.c.b16 %v510_v22, %v510_v22 }
   0xf   : > { %v2893_v7 = vld [vmem:[%s2878_s16 + $0x18] sm:$0xff]  ;;  %v2898_v8 = vld [vmem:[%s2878_s16 + $0x20] sm:$0xff]  ;;  %793 = vmatpush.bf16.msra.mxu2 %v2356_v12  ;;  %v2915_v15 = vld [vmem:[%s2878_s16 + $0x28] sm:$0xff] }
  0x10   : > { %v540_v3 = vsel %vm538_vm0, %v511_v2, 0  ;;  %842 = vmatpush.bf16.msra.mxu3 %v2360_v14  ;;  %v2639_v18 = vld [vmem:[%s3740_s3 + $0x64] sm:$0xf]  ;;  %v2349_v20 = vld [vmem:[%s3740_s3 + $0x68] sm:$0xf0]  ;;  %v543_v34 = vsel %vm538_vm0, %v512_v28, 0 }
  0x11   : > { %552 = vmatpush.bf16.msra.mxu0 %v540_v3  ;;  %v2352_v21 = vor.u32 %v2639_v18, %v2349_v20  ;;  %v2339_v23 = vld [vmem:[%s3740_s3 + $0x50] sm:$0xf]  ;;  %v2638_v24 = vld [vmem:[%s3740_s3 + $0x54] sm:$0xf0]  ;;  %v2637_v25 = vld [vmem:[%s3740_s3 + $0x54] sm:$0xf]  ;;  %601 = vmatpush.bf16.msra.mxu1 %v543_v34 }
  0x12   : > { %v2340_v26 = vor.u32 %v2638_v24, %v2339_v23  ;;  %v2341_v27 = vld [vmem:[%s3740_s3 + $0x58] sm:$0xf0]  ;;  %v2331_v30 = vld [vmem:[%s3740_s3 + $0x40] sm:$0xf]  ;;  %v2636_v31 = vld [vmem:[%s3740_s3 + $0x44] sm:$0xf0] }
  0x13   : > { %794 = vmatpush.bf16.msra.mxu2 %v2348_v19  ;;  %v2344_v29 = vor.u32 %v2637_v25, %v2341_v27  ;;  %v2635_v32 = vld [vmem:[%s3740_s3 + $0x44] sm:$0xf]  ;;  %v2333_v33 = vld [vmem:[%s3740_s3 + $0x48] sm:$0xf0]  ;;  %v2332_v35 = vor.u32 %v2636_v31, %v2331_v30  ;;  %v2323_v37 = vld [vmem:[%s3740_s3 + $0x30] sm:$0xf] }
  0x14   : > { %2281 = vmatmul.msk.bf16.vlgmr.msra.gmra.mxu0 %vm513_vm1, %v2619_v4  ;;  %843 = vmatpush.bf16.msra.mxu3 %v2352_v21  ;;  %v2336_v36 = vor.u32 %v2635_v32, %v2333_v33  ;;  %v2634_v38 = vld [vmem:[%s3740_s3 + $0x34] sm:$0xf0]  ;;  %v2633_v39 = vld [vmem:[%s3740_s3 + $0x34] sm:$0xf]  ;;  %v2325_v41 = vld [vmem:[%s3740_s3 + $0x38] sm:$0xf0] }
  0x15   : > { %2289 = vmatmul.msk.bf16.vlgmr.msra.gmra.mxu1 %vm513_vm1, %v2619_v4  ;;  %v2324_v40 = vor.u32 %v2634_v38, %v2323_v37  ;;  %v2970_v42 = vld [vmem:[%s2878_s16 + $0x30] sm:$0xff]  ;;  %v2328_v43 = vor.u32 %v2633_v39, %v2325_v41  ;;  %v2315_v44 = vld [vmem:[%s3740_s3 + $0x20] sm:$0xf]  ;;  %v2632_v45 = vld [vmem:[%s3740_s3 + $0x24] sm:$0xf0] }
  0x16   : > { %v2631_v46 = vld [vmem:[%s3740_s3 + $0x24] sm:$0xf]  ;;  %v2316_v47 = vor.u32 %v2632_v45, %v2315_v44  ;;  %v2317_v48 = vld [vmem:[%s3740_s3 + $0x28] sm:$0xf0]  ;;  %v2307_v50 = vld [vmem:[%s3740_s3 + $0x10] sm:$0xf] }
  0x17   : > { %795 = vmatpush.bf16.msra.mxu2 %v2340_v26  ;;  %v2320_v49 = vor.u32 %v2631_v46, %v2317_v48  ;;  %v2630_v51 = vld [vmem:[%s3740_s3 + $0x14] sm:$0xf0]  ;;  %v2629_v52 = vld [vmem:[%s3740_s3 + $0x14] sm:$0xf]  ;;  %v2309_v54 = vld [vmem:[%s3740_s3 + $0x18] sm:$0xf0] }
  0x18   : > { %844 = vmatpush.bf16.msra.mxu3 %v2344_v29  ;;  %v2308_v53 = vor.u32 %v2630_v51, %v2307_v50  ;;  %v2312_v55 = vor.u32 %v2629_v52, %v2309_v54  ;;  %v2299_v56 = vld [vmem:[%s3740_s3] sm:$0xf]  ;;  %v2628_v57 = vld [vmem:[%s3740_s3 + $0x4] sm:$0xf0]  ;;  %v2627_v58 = vld [vmem:[%s3740_s3 + $0x4] sm:$0xf] }
  0x19   : > { %v2300_v59 = vor.u32 %v2628_v57, %v2299_v56  ;;  %v2301_v60 = vld [vmem:[%s3740_s3 + $0x8] sm:$0xf0]  ;;  %v3013_v62 = vld [vmem:[%s2878_s16 + $0x38] sm:$0xff]  ;;  %v2483_v63 = vld [vmem:[%s3744_s7 + $0x70] sm:$0xf]  ;;  %s2248_s16 = sshll.u32 %s3752_s29, 3 }
  0x1a   : > { %v2304_v61 = vor.u32 %v2627_v58, %v2301_v60  ;;  %v2674_v0 = vld [vmem:[%s3744_s7 + $0x74] sm:$0xf0]  ;;  %v2673_v2 = vld [vmem:[%s3744_s7 + $0x74] sm:$0xf]  ;;  %v2485_v3 = vld [vmem:[%s3744_s7 + $0x78] sm:$0xf0]  ;;  %s3652_s20 = scalar_lea.vmem %s3750_s13, %s2248_s16 }
  0x1b   : > { %796 = vmatpush.bf16.msra.mxu2 %v2332_v35  ;;  %v2484_v1 = vor.u32 %v2674_v0, %v2483_v63  ;;  %v2488_v4 = vor.u32 %v2673_v2, %v2485_v3  ;;  %v2672_v9 = vld [vmem:[%s3744_s7 + $0x64] sm:$0xf0]  ;;  %v3040_v10 = vld [vmem:[%s3739_s2] sm:$0x3]  ;;  %v2671_v14 = vld [vmem:[%s3744_s7 + $0x64] sm:$0xf] }
  0x1c   : > { %845 = vmatpush.bf16.msra.mxu3 %v2336_v36  ;;  %v3043_v13 = vperm.slane %v3040_v10, 0  ;;  %v2477_v16 = vld [vmem:[%s3744_s7 + $0x68] sm:$0xf0]  ;;  %v2658_v18 = vld [vmem:[%s3742_s5 + $0x78] sm:$0xff]  ;;  %v2467_v25 = vld [vmem:[%s3744_s7 + $0x50] sm:$0xf] }
  0x1d   : > { %v2480_v17 = vor.u32 %v2671_v14, %v2477_v16  ;;  %1120 = vmatpush.bf16.msrb.mxu1 %v2658_v18  ;;  %v2670_v26 = vld [vmem:[%s3744_s7 + $0x54] sm:$0xf0]  ;;  %v2649_v29 = vld [vmem:[%s3742_s5 + $0x30] sm:$0xff]  ;;  %v2469_v30 = vld [vmem:[%s3744_s7 + $0x58] sm:$0xf0] }
  0x1e   : > { %v2468_v28 = vor.u32 %v2670_v26, %v2467_v25  ;;  %v2657_v32 = vld [vmem:[%s3742_s5 + $0x70] sm:$0xff]  ;;  %v2459_v39 = vld [vmem:[%s3744_s7 + $0x40] sm:$0xf]  ;;  %v2648_v44 = vld [vmem:[%s3742_s5 + $0x28] sm:$0xff] }
  0x1f   : > { %797 = vmatpush.bf16.msra.mxu2 %v2324_v40  ;;  %v2668_v40 = vld [vmem:[%s3744_s7 + $0x44] sm:$0xf0]  ;;  %v2461_v45 = vld [vmem:[%s3744_s7 + $0x48] sm:$0xf0]  ;;  %v2451_v54 = vld [vmem:[%s3744_s7 + $0x30] sm:$0xf] }
  0x20   : > { %846 = vmatpush.bf16.msra.mxu3 %v2328_v43  ;;  %v2460_v43 = vor.u32 %v2668_v40, %v2459_v39  ;;  %v2647_v58 = vld [vmem:[%s3742_s5 + $0x20] sm:$0xff]  ;;  %v2445_v14 = vld [vmem:[%s3744_s7 + $0x28] sm:$0xf0]  ;;  %v2662_v25 = vld [vmem:[%s3744_s7 + $0x14] sm:$0xf0] }
  0x21   : > { %1121 = vmatpush.bf16.msrb.mxu1 %v2657_v32  ;;  %v2660_v39 = vld [vmem:[%s3744_s7 + $0x4] sm:$0xf0] }
  0x22   : > { %v2644_v40 = vld [vmem:[%s3742_s5 + $0x8] sm:$0xff] }
  0x23   : > { %798 = vmatpush.bf16.msra.mxu2 %v2316_v47  ;;  %v2656_v47 = vld [vmem:[%s3742_s5 + $0x68] sm:$0xff] }
  0x24   : > { %2282 = vmatmul.msk.bf16.gmra.mxu0 %vm513_vm1, %v2883_v5  ;;  %847 = vmatpush.bf16.msra.mxu3 %v2320_v49 }
  0x25   : > { %2290 = vmatmul.msk.bf16.gmra.mxu1 %vm513_vm1, %v2883_v5  ;;  %v2475_v5 = vld [vmem:[%s3744_s7 + $0x60] sm:$0xf] }
  0x26   : > { %v2476_v12 = vor.u32 %v2672_v9, %v2475_v5  ;;  %1122 = vmatpush.bf16.msrb.mxu1 %v2656_v47  ;;  %v2443_v5 = vld [vmem:[%s3744_s7 + $0x20] sm:$0xf]  ;;  %v2664_v9 = vld [vmem:[%s3744_s7 + $0x24] sm:$0xf0] }
  0x27   : > { %799 = vmatpush.bf16.msra.mxu2 %v2308_v53 }
  0x28   : > { %848 = vmatpush.bf16.msra.mxu3 %v2312_v55  ;;  %v2666_v55 = vld [vmem:[%s3744_s7 + $0x34] sm:$0xf0] }
  0x29   : > { %v2452_v57 = vor.u32 %v2666_v55, %v2451_v54  ;;  %v2643_v55 = vld [vmem:[%s3742_s5] sm:$0xff] }
  0x2b   : > { %800 = vmatpush.bf16.msra.mxu2 %v2300_v59  ;;  %v2453_v59 = vld [vmem:[%s3744_s7 + $0x38] sm:$0xf0] }
  0x2c   : > { %849 = vmatpush.bf16.msra.mxu3 %v2304_v61  ;;  %v2655_v61 = vld [vmem:[%s3742_s5 + $0x60] sm:$0xff] }
  0x2d   : > { %1123 = vmatpush.bf16.msrb.mxu1 %v2655_v61 }
  0x2f   : > { %1295 = vmatpush.bf16.msrb.mxu2 %v2484_v1 }
  0x30   : > { %1344 = vmatpush.bf16.msrb.mxu3 %v2488_v4 }
  0x33   : > { %1296 = vmatpush.bf16.msrb.mxu2 %v2476_v12  ;;  %v2444_v12 = vor.u32 %v2664_v9, %v2443_v5 }
  0x34   : > { %2283 = vmatmul.msk.bf16.gmra.mxu0 %vm513_vm1, %v2888_v6  ;;  %1345 = vmatpush.bf16.msrb.mxu3 %v2480_v17  ;;  %v2654_v17 = vld [vmem:[%s3742_s5 + $0x58] sm:$0xff] }
  0x35   : > { %2291 = vmatmul.msk.bf16.gmra.mxu1 %vm513_vm1, %v2888_v6  ;;  %v2650_v6 = vld [vmem:[%s3742_s5 + $0x38] sm:$0xff] }
  0x36   : > { %1071 = vmatpush.bf16.msrb.mxu0 %v2650_v6  ;;  %v2646_v6 = vld [vmem:[%s3742_s5 + $0x18] sm:$0xff]  ;;  %1124 = vmatpush.bf16.msrb.mxu1 %v2654_v17 }
  0x37   : > { %1297 = vmatpush.bf16.msrb.mxu2 %v2468_v28  ;;  %v2645_v28 = vld [vmem:[%s3742_s5 + $0x10] sm:$0xff] }
  0x3a   : > { %1072 = vmatpush.bf16.msrb.mxu0 %v2649_v29  ;;  %v2437_v29 = vld [vmem:[%s3744_s7 + $0x18] sm:$0xf0] }
  0x3b   : > { %1298 = vmatpush.bf16.msrb.mxu2 %v2460_v43 }
  0x3e   : > { %1073 = vmatpush.bf16.msrb.mxu0 %v2648_v44  ;;  %v2659_v44 = vld [vmem:[%s3744_s7 + $0x4] sm:$0xf] }
  0x3f   : > { %1299 = vmatpush.bf16.msrb.mxu2 %v2452_v57  ;;  %v2651_v57 = vld [vmem:[%s3742_s5 + $0x40] sm:$0xff] }
  0x42   : > { %1074 = vmatpush.bf16.msrb.mxu0 %v2647_v58 }
  0x43   : > { %1300 = vmatpush.bf16.msrb.mxu2 %v2444_v12 }
  0x44   : > { %2284 = vmatmul.msk.bf16.gmra.mxu0 %vm513_vm1, %v2893_v7 }
  0x45   : > { %2292 = vmatmul.msk.bf16.gmra.mxu1 %vm513_vm1, %v2893_v7  ;;  %v2669_v7 = vld [vmem:[%s3744_s7 + $0x54] sm:$0xf] }
  0x46   : > { %v2472_v31 = vor.u32 %v2669_v7, %v2469_v30  ;;  %1075 = vmatpush.bf16.msrb.mxu0 %v2646_v6  ;;  %v2653_v30 = vld [vmem:[%s3742_s5 + $0x50] sm:$0xff] }
  0x47   : > { %1125 = vmatpush.bf16.msrb.mxu1 %v2653_v30  ;;  %v2681_v6 = vld [vmem:[%s3746_s9 + $0x30] sm:$0xff] }
  0x48   : > { %1346 = vmatpush.bf16.msrb.mxu3 %v2472_v31 }
  0x4a   : > { %1076 = vmatpush.bf16.msrb.mxu0 %v2645_v28 }
  0x4e   : > { %1077 = vmatpush.bf16.msrb.mxu0 %v2644_v40 }
  0x52   : > { %1078 = vmatpush.bf16.msrb.mxu0 %v2643_v55 }
  0x54   : > { %2285 = vmatmul.msk.bf16.gmra.mxu0 %vm513_vm1, %v2898_v8 }
  0x55   : > { %2293 = vmatmul.msk.bf16.gmra.mxu1 %vm513_vm1, %v2898_v8  ;;  %v2667_v8 = vld [vmem:[%s3744_s7 + $0x44] sm:$0xf] }
  0x56   : > { %v2464_v46 = vor.u32 %v2667_v8, %v2461_v45  ;;  %v2429_v8 = vld [vmem:[%s3744_s7 + $0x8] sm:$0xf0] }
  0x57   : > { %v2652_v45 = vld [vmem:[%s3742_s5 + $0x48] sm:$0xff] }
  0x58   : > { %1347 = vmatpush.bf16.msrb.mxu3 %v2464_v46  ;;  %v2432_v46 = vor.u32 %v2659_v44, %v2429_v8  ;;  %1126 = vmatpush.bf16.msrb.mxu1 %v2652_v45 }
  0x5c   : > { %1127 = vmatpush.bf16.msrb.mxu1 %v2651_v57 }
  0x64   : > { %2286 = vmatmul.msk.bf16.gmra.mxu0 %vm513_vm1, %v2915_v15 }
  0x65   : > { %2294 = vmatmul.msk.bf16.gmra.mxu1 %vm513_vm1, %v2915_v15  ;;  %v2665_v15 = vld [vmem:[%s3744_s7 + $0x34] sm:$0xf] }
  0x66   : > { %v2456_v60 = vor.u32 %v2665_v15, %v2453_v59 }
  0x68   : > { %1348 = vmatpush.bf16.msrb.mxu3 %v2456_v60 }
  0x74   : > { %2287 = vmatmul.msk.bf16.gmra.mxu0 %vm513_vm1, %v2970_v42 }
  0x75   : > { %2295 = vmatmul.msk.bf16.gmra.mxu1 %vm513_vm1, %v2970_v42  ;;  %v2663_v42 = vld [vmem:[%s3744_s7 + $0x24] sm:$0xf] }
  0x76   : > { %v2448_v16 = vor.u32 %v2663_v42, %v2445_v14  ;;  %v707_v42 = vld [vmem:[%s3741_s4] sm:$0x3] }
  0x78   : > { %1349 = vmatpush.bf16.msrb.mxu3 %v2448_v16 }
  0x84   : > { %2288 = vmatmul.msk.bf16.gmra.mxu0 %vm513_vm1, %v3013_v62 }
  0x85   : > { %2296 = vmatmul.msk.bf16.gmra.mxu1 %vm513_vm1, %v3013_v62  ;;  %v2661_v62 = vld [vmem:[%s3744_s7 + $0x14] sm:$0xf] }
  0x86   : > { %v2440_v7 = vor.u32 %v2661_v62, %v2437_v29 }
  0x88   : > { %1350 = vmatpush.bf16.msrb.mxu3 %v2440_v7 }
  0x8c   : > { %1351 = vmatpush.bf16.msrb.mxu3 %v2432_v46 }
  0x91   : > { %v554_v11 = vpop.f32.mrf.mxu0 }
  0x92   : > { %v555_v19 = vadd.f32 %v554_v11, %v3043_v13 }
  0x94   : > { %v643_v22 = vmax.f32 %v555_v19, 0.0 }
  0x99   : > { %v556_v20 = vpop.f32.mrf.mxu0 }
  0x9a   : > { %v557_v21 = vadd.f32 %v556_v20, %v3043_v13 }
  0x9c   : > { %v645_v23 = vmax.f32 %v557_v21, 0.0 }
  0x9e   : > { %v675_v24 = vpack.c.bf16 %v645_v23, %v643_v22 }
  0xa0   : > { %801 = vmatmul.bf16.vlgmr.msra.gmra.mxu2 %v675_v24  ;;  %850 = vmatmul.bf16.vlgmr.msra.gmra.mxu3 %v675_v24  ;;  %v2435_v24 = vld [vmem:[%s3744_s7 + $0x10] sm:$0xf] }
  0xa1   : > { %v559_v27 = vpop.f32.mrf.mxu0 }
  0xa2   : > { %v560_v33 = vadd.f32 %v559_v27, %v3043_v13  ;;  %v2436_v27 = vor.u32 %v2662_v25, %v2435_v24 }
  0xa4   : > { %v647_v36 = vmax.f32 %v560_v33, 0.0  ;;  %1301 = vmatpush.bf16.msrb.mxu2 %v2436_v27 }
  0xa9   : > { %v561_v34 = vpop.f32.mrf.mxu0 }
  0xaa   : > { %v562_v35 = vadd.f32 %v561_v34, %v3043_v13 }
  0xac   : > { %v649_v37 = vmax.f32 %v562_v35, 0.0 }
  0xae   : > { %v676_v38 = vpack.c.bf16 %v649_v37, %v647_v36  ;;  %v603_v36 = vpop.f32.mrf.mxu1 }
  0xb0   : > { %806 = vmatmul.bf16.gmra.mxu2 %v676_v38  ;;  %855 = vmatmul.bf16.gmra.mxu3 %v676_v38  ;;  %v2427_v38 = vld [vmem:[%s3744_s7] sm:$0xf] }
  0xb1   : > { %v564_v41 = vpop.f32.mrf.mxu0  ;;  %v2428_v43 = vor.u32 %v2660_v39, %v2427_v38 }
  0xb2   : > { %v565_v48 = vadd.f32 %v564_v41, %v3043_v13 }
  0xb3   : > { %1302 = vmatpush.bf16.msrb.mxu2 %v2428_v43  ;;  %v2688_v43 = vld [vmem:[%s3746_s9 + $0x68] sm:$0xff] }
  0xb4   : > { %v651_v51 = vmax.f32 %v565_v48, 0.0 }
  0xb6   : > { %v605_v47 = vpop.f32.mrf.mxu1 }
  0xb9   : > { %v566_v49 = vpop.f32.mrf.mxu0 }
  0xba   : > { %v567_v50 = vadd.f32 %v566_v49, %v3043_v13 }
  0xbc   : > { %v653_v52 = vmax.f32 %v567_v50, 0.0 }
  0xbe   : > { %v677_v53 = vpack.c.bf16 %v653_v52, %v651_v51  ;;  %v608_v54 = vpop.f32.mrf.mxu1 }
  0xc0   : > { %811 = vmatmul.bf16.gmra.mxu2 %v677_v53  ;;  %860 = vmatmul.bf16.gmra.mxu3 %v677_v53 }
  0xc1   : > { %v569_v56 = vpop.f32.mrf.mxu0 }
  0xc2   : > { %v570_v63 = vadd.f32 %v569_v56, %v3043_v13 }
  0xc4   : > { %v655_v2 = vmax.f32 %v570_v63, 0.0 }
  0xc6   : > { %v610_v60 = vpop.f32.mrf.mxu1 }
  0xc9   : > { %v571_v0 = vpop.f32.mrf.mxu0 }
  0xca   : > { %v572_v1 = vadd.f32 %v571_v0, %v3043_v13 }
  0xcc   : > { %v657_v3 = vmax.f32 %v572_v1, 0.0  ;;  %v3198_v1 = vperm.slane %v3040_v10, 1 }
  0xce   : > { %v678_v4 = vpack.c.bf16 %v657_v3, %v655_v2  ;;  %v2682_v2 = vld [vmem:[%s3746_s9 + $0x38] sm:$0xff]  ;;  %v613_v3 = vpop.f32.mrf.mxu1  ;;  %v606_v5 = vadd.f32 %v605_v47, %v3198_v1  ;;  %v609_v17 = vadd.f32 %v608_v54, %v3198_v1 }
  0xcf   : > { %1573 = vmatpush.bf16.msra.mxu0 %v2682_v2  ;;  %v614_v40 = vadd.f32 %v613_v3, %v3198_v1  ;;  %v2687_v2 = vld [vmem:[%s3746_s9 + $0x60] sm:$0xff] }
  0xd0   : > { %816 = vmatmul.bf16.gmra.mxu2 %v678_v4  ;;  %865 = vmatmul.bf16.gmra.mxu3 %v678_v4  ;;  %v604_v4 = vadd.f32 %v603_v36, %v3198_v1 }
  0xd1   : > { %v574_v11 = vpop.f32.mrf.mxu0  ;;  %v652_v44 = vmax.f32 %v614_v40, 0.0 }
  0xd2   : > { %v575_v18 = vadd.f32 %v574_v11, %v3043_v13  ;;  %v644_v9 = vmax.f32 %v604_v4, 0.0  ;;  %v646_v11 = vmax.f32 %v606_v5, 0.0 }
  0xd3   : > { %1574 = vmatpush.bf16.msra.mxu0 %v2681_v6 }
  0xd4   : > { %v659_v21 = vmax.f32 %v575_v18, 0.0  ;;  %v683_v12 = vpack.c.bf16 %v646_v11, %v644_v9  ;;  %v611_v18 = vadd.f32 %v610_v60, %v3198_v1 }
  0xd6   : > { %v615_v10 = vpop.f32.mrf.mxu1  ;;  %v650_v24 = vmax.f32 %v611_v18, 0.0 }
  0xd9   : > { %v576_v19 = vpop.f32.mrf.mxu0 }
  0xda   : > { %v577_v20 = vadd.f32 %v576_v19, %v3043_v13  ;;  %v3216_v19 = vperm.slane %v707_v42, 0 }
  0xdc   : > { %v661_v22 = vmax.f32 %v577_v20, 0.0  ;;  %v3218_v20 = vperm.slane %v707_v42, 1 }
  0xde   : > { %v679_v23 = vpack.c.bf16 %v661_v22, %v659_v21  ;;  %v2689_v21 = vld [vmem:[%s3746_s9 + $0x70] sm:$0xff]  ;;  %v618_v22 = vpop.f32.mrf.mxu1 }
  0xe0   : > { %821 = vmatmul.bf16.gmra.mxu2 %v679_v23  ;;  %870 = vmatmul.bf16.gmra.mxu3 %v679_v23  ;;  %v648_v23 = vmax.f32 %v609_v17, 0.0 }
  0xe1   : > { %v579_v26 = vpop.f32.mrf.mxu0 }
  0xe2   : > { %v580_v31 = vadd.f32 %v579_v26, %v3043_v13  ;;  %v684_v7 = vpack.c.bf16 %v650_v24, %v648_v23  ;;  %v2678_v23 = vld [vmem:[%s3746_s9 + $0x18] sm:$0xff] }
  0xe4   : > { %v663_v34 = vmax.f32 %v580_v31, 0.0 }
  0xe6   : > { %v620_v36 = vpop.f32.mrf.mxu1 }
  0xe9   : > { %v581_v32 = vpop.f32.mrf.mxu0 }
  0xea   : > { %v582_v33 = vadd.f32 %v581_v32, %v3043_v13 }
  0xec   : > { %v665_v35 = vmax.f32 %v582_v33, 0.0 }
  0xee   : > { %v680_v37 = vpack.c.bf16 %v665_v35, %v663_v34 }
  0xf0   : > { %826 = vmatmul.bf16.gmra.mxu2 %v680_v37  ;;  %875 = vmatmul.bf16.gmra.mxu3 %v680_v37  ;;  %v2680_v37 = vld [vmem:[%s3746_s9 + $0x28] sm:$0xff] }
  0xf1   : > { %v584_v41 = vpop.f32.mrf.mxu0  ;;  %1575 = vmatpush.bf16.msra.mxu0 %v2680_v37 }
  0xf2   : > { %v585_v48 = vadd.f32 %v584_v41, %v3043_v13  ;;  %v616_v41 = vadd.f32 %v615_v10, %v3198_v1 }
  0xf4   : > { %v667_v51 = vmax.f32 %v585_v48, 0.0  ;;  %v654_v8 = vmax.f32 %v616_v41, 0.0 }
  0xf9   : > { %v586_v49 = vpop.f32.mrf.mxu0 }
  0xfa   : > { %v587_v50 = vadd.f32 %v586_v49, %v3043_v13 }
  0xfc   : > { %v669_v52 = vmax.f32 %v587_v50, 0.0 }
  0xfe   : > { %v681_v53 = vpack.c.bf16 %v669_v52, %v667_v51  ;;  %v623_v51 = vpop.f32.mrf.mxu1  ;;  %v685_v52 = vpack.c.bf16 %v654_v8, %v652_v44  ;;  %v2677_v44 = vld [vmem:[%s3746_s9 + $0x10] sm:$0xff] }
 0x100   : > { %831 = vmatmul.bf16.gmra.mxu2 %v681_v53  ;;  %880 = vmatmul.bf16.gmra.mxu3 %v681_v53 }
 0x101   : > { %v589_v56 = vpop.f32.mrf.mxu0 }
 0x102   : > { %v590_v58 = vadd.f32 %v589_v56, %v3043_v13 }
 0x104   : > { %v671_v61 = vmax.f32 %v590_v58, 0.0 }
 0x109   : > { %v591_v15 = vpop.f32.mrf.mxu0 }
 0x10a   : > { %v592_v59 = vadd.f32 %v591_v15, %v3043_v13  ;;  %v2690_v13 = vld [vmem:[%s3746_s9 + $0x78] sm:$0xff]  ;;  %v2679_v15 = vld [vmem:[%s3746_s9 + $0x20] sm:$0xff] }
 0x10b   : > { %1622 = vmatpush.bf16.msra.mxu1 %v2690_v13  ;;  %1576 = vmatpush.bf16.msra.mxu0 %v2679_v15 }
 0x10c   : > { %v673_v63 = vmax.f32 %v592_v59, 0.0 }
 0x10e   : > { %v682_v0 = vpack.c.bf16 %v673_v63, %v671_v61  ;;  %v619_v61 = vadd.f32 %v618_v22, %v3198_v1  ;;  %v621_v63 = vadd.f32 %v620_v36, %v3198_v1 }
 0x10f   : > { %1623 = vmatpush.bf16.msra.mxu1 %v2689_v21  ;;  %1577 = vmatpush.bf16.msra.mxu0 %v2678_v23 }
 0x110   : > { %836 = vmatmul.bf16.gmra.mxu2 %v682_v0  ;;  %885 = vmatmul.bf16.gmra.mxu3 %v682_v0  ;;  %v625_v0 = vpop.f32.mrf.mxu1  ;;  %v656_v3 = vmax.f32 %v619_v61, 0.0  ;;  %v658_v4 = vmax.f32 %v621_v63, 0.0 }
 0x112   : > { %v686_v6 = vpack.c.bf16 %v658_v4, %v656_v3  ;;  %v2676_v3 = vld [vmem:[%s3746_s9 + $0x8] sm:$0xff] }
 0x113   : > { %1624 = vmatpush.bf16.msra.mxu1 %v2688_v43  ;;  %1578 = vmatpush.bf16.msra.mxu0 %v2677_v44 }
 0x117   : > { %1625 = vmatpush.bf16.msra.mxu1 %v2687_v2  ;;  %1579 = vmatpush.bf16.msra.mxu0 %v2676_v3 }
 0x118   : > { %v628_v22 = vpop.f32.mrf.mxu1 }
 0x120   : > { %1303 = vmatmul.bf16.vlgmr.msrb.gmra.mxu2 %v683_v12  ;;  %1352 = vmatmul.bf16.vlgmr.msrb.gmra.mxu3 %v683_v12 }
 0x123   : > { %v802_v14 = vpop.f32.mrf.mxu2  ;;  %v851_v16 = vpop.f32.mrf.mxu3 }
 0x124   : > { %v803_v25 = vadd.f32 %v802_v14, %v3216_v19  ;;  %v852_v26 = vadd.f32 %v851_v16, %v3218_v20 }
 0x126   : > { %v891_v30 = vmax.f32 %v803_v25, 0.0  ;;  %v892_v31 = vmax.f32 %v852_v26, 0.0  ;;  %v624_v26 = vadd.f32 %v623_v51, %v3198_v1 }
 0x12b   : > { %v804_v27 = vpop.f32.mrf.mxu2  ;;  %v853_v28 = vpop.f32.mrf.mxu3 }
 0x12c   : > { %v805_v62 = vadd.f32 %v804_v27, %v3216_v19  ;;  %v854_v29 = vadd.f32 %v853_v28, %v3218_v20  ;;  %v626_v27 = vadd.f32 %v625_v0, %v3198_v1  ;;  %v2686_v28 = vld [vmem:[%s3746_s9 + $0x58] sm:$0xff] }
 0x12d   : > { %1626 = vmatpush.bf16.msra.mxu1 %v2686_v28 }
 0x12e   : > { %v893_v32 = vmax.f32 %v805_v62, 0.0  ;;  %v894_v33 = vmax.f32 %v854_v29, 0.0  ;;  %v660_v62 = vmax.f32 %v624_v26, 0.0  ;;  %v662_v29 = vmax.f32 %v626_v27, 0.0  ;;  %v2698_v27 = vld [vmem:[%s3748_s11 + $0x38] sm:$0xff] }
 0x12f   : > { %1872 = vmatpush.bf16.msra.mxu3 %v2698_v27 }
 0x130   : > { %1308 = vmatmul.bf16.gmra.mxu2 %v684_v7  ;;  %1357 = vmatmul.bf16.gmra.mxu3 %v684_v7  ;;  %v923_v34 = vpack.c.bf16 %v893_v32, %v891_v30  ;;  %v924_v35 = vpack.c.bf16 %v894_v33, %v892_v31  ;;  %v630_v31 = vpop.f32.mrf.mxu1  ;;  %v687_v36 = vpack.c.bf16 %v662_v29, %v660_v62 }
 0x132   : > { %1079 = vmatmul.bf16.vlgmr.msrb.gmra.mxu0 %v923_v34  ;;  %1128 = vmatmul.bf16.vlgmr.msrb.gmra.mxu1 %v924_v35 }
 0x133   : > { %v807_v38 = vpop.f32.mrf.mxu2  ;;  %v856_v39 = vpop.f32.mrf.mxu3 }
 0x134   : > { %v808_v45 = vadd.f32 %v807_v38, %v3216_v19  ;;  %v857_v46 = vadd.f32 %v856_v39, %v3218_v20 }
 0x136   : > { %v895_v53 = vmax.f32 %v808_v45, 0.0  ;;  %v896_v54 = vmax.f32 %v857_v46, 0.0 }
 0x138   : > { %v633_v46 = vpop.f32.mrf.mxu1 }
 0x13b   : > { %v809_v47 = vpop.f32.mrf.mxu2  ;;  %v858_v48 = vpop.f32.mrf.mxu3 }
 0x13c   : > { %v810_v49 = vadd.f32 %v809_v47, %v3216_v19  ;;  %v859_v50 = vadd.f32 %v858_v48, %v3218_v20  ;;  %v629_v47 = vadd.f32 %v628_v22, %v3198_v1  ;;  %v631_v48 = vadd.f32 %v630_v31, %v3198_v1 }
 0x13e   : > { %v897_v55 = vmax.f32 %v810_v49, 0.0  ;;  %v898_v56 = vmax.f32 %v859_v50, 0.0  ;;  %v2685_v49 = vld [vmem:[%s3746_s9 + $0x50] sm:$0xff]  ;;  %v664_v50 = vmax.f32 %v629_v47, 0.0  ;;  %v666_v51 = vmax.f32 %v631_v48, 0.0 }
 0x13f   : > { %1627 = vmatpush.bf16.msra.mxu1 %v2685_v49 }
 0x140   : > { %1313 = vmatmul.bf16.gmra.mxu2 %v685_v52  ;;  %1362 = vmatmul.bf16.gmra.mxu3 %v685_v52  ;;  %v925_v57 = vpack.c.bf16 %v897_v55, %v895_v53  ;;  %v926_v58 = vpack.c.bf16 %v898_v56, %v896_v54  ;;  %v635_v63 = vpop.f32.mrf.mxu1 }
 0x142   : > { %1084 = vmatmul.bf16.gmra.mxu0 %v925_v57  ;;  %1133 = vmatmul.bf16.gmra.mxu1 %v926_v58  ;;  %v688_v58 = vpack.c.bf16 %v666_v51, %v664_v50  ;;  %v2694_v50 = vld [vmem:[%s3748_s11 + $0x18] sm:$0xff] }
 0x143   : > { %v812_v59 = vpop.f32.mrf.mxu2  ;;  %v861_v60 = vpop.f32.mrf.mxu3 }
 0x144   : > { %v813_v5 = vadd.f32 %v812_v59, %v3216_v19  ;;  %v862_v13 = vadd.f32 %v861_v60, %v3218_v20 }
 0x146   : > { %v899_v42 = vmax.f32 %v813_v5, 0.0  ;;  %v900_v14 = vmax.f32 %v862_v13, 0.0  ;;  %v634_v13 = vadd.f32 %v633_v46, %v3198_v1 }
 0x14b   : > { %v814_v9 = vpop.f32.mrf.mxu2  ;;  %v863_v11 = vpop.f32.mrf.mxu3 }
 0x14c   : > { %v815_v12 = vadd.f32 %v814_v9, %v3216_v19  ;;  %v864_v10 = vadd.f32 %v863_v11, %v3218_v20  ;;  %v636_v9 = vadd.f32 %v635_v63, %v3198_v1  ;;  %v2684_v11 = vld [vmem:[%s3746_s9 + $0x48] sm:$0xff] }
 0x14d   : > { %1628 = vmatpush.bf16.msra.mxu1 %v2684_v11 }
 0x14e   : > { %v901_v16 = vmax.f32 %v815_v12, 0.0  ;;  %v902_v17 = vmax.f32 %v864_v10, 0.0  ;;  %v638_v12 = vpop.f32.mrf.mxu1  ;;  %v668_v10 = vmax.f32 %v634_v13, 0.0 }
 0x150   : > { %1318 = vmatmul.bf16.gmra.mxu2 %v686_v6  ;;  %1367 = vmatmul.bf16.gmra.mxu3 %v686_v6  ;;  %v927_v18 = vpack.c.bf16 %v901_v16, %v899_v42  ;;  %v928_v21 = vpack.c.bf16 %v902_v17, %v900_v14  ;;  %v670_v6 = vmax.f32 %v636_v9, 0.0  ;;  %v1209_v9 = vld [vmem:[%s3745_s8] sm:$0x3] }
 0x152   : > { %1089 = vmatmul.bf16.gmra.mxu0 %v927_v18  ;;  %1138 = vmatmul.bf16.gmra.mxu1 %v928_v21  ;;  %v689_v22 = vpack.c.bf16 %v670_v6, %v668_v10  ;;  %v3335_v10 = vperm.slane %v1209_v9, 1 }
 0x153   : > { %v817_v24 = vpop.f32.mrf.mxu2  ;;  %v866_v25 = vpop.f32.mrf.mxu3 }
 0x154   : > { %v818_v7 = vadd.f32 %v817_v24, %v3216_v19  ;;  %v867_v30 = vadd.f32 %v866_v25, %v3218_v20 }
 0x156   : > { %v903_v37 = vmax.f32 %v818_v7, 0.0  ;;  %v904_v38 = vmax.f32 %v867_v30, 0.0  ;;  %v640_v29 = vpop.f32.mrf.mxu1  ;;  %v2675_v7 = vld [vmem:[%s3746_s9] sm:$0xff] }
 0x157   : > { %1580 = vmatpush.bf16.msra.mxu0 %v2675_v7 }
 0x15b   : > { %v819_v32 = vpop.f32.mrf.mxu2  ;;  %v868_v33 = vpop.f32.mrf.mxu3 }
 0x15c   : > { %v820_v34 = vadd.f32 %v819_v32, %v3216_v19  ;;  %v869_v35 = vadd.f32 %v868_v33, %v3218_v20  ;;  %v2697_v32 = vld [vmem:[%s3748_s11 + $0x30] sm:$0xff]  ;;  %v639_v33 = vadd.f32 %v638_v12, %v3198_v1 }
 0x15d   : > { %1873 = vmatpush.bf16.msra.mxu3 %v2697_v32 }
 0x15e   : > { %v905_v39 = vmax.f32 %v820_v34, 0.0  ;;  %v906_v40 = vmax.f32 %v869_v35, 0.0  ;;  %v641_v34 = vadd.f32 %v640_v29, %v3198_v1  ;;  %v2683_v35 = vld [vmem:[%s3746_s9 + $0x40] sm:$0xff] }
 0x15f   : > { %1629 = vmatpush.bf16.msra.mxu1 %v2683_v35  ;;  %v2695_v1 = vld [vmem:[%s3748_s11 + $0x20] sm:$0xff] }
 0x160   : > { %1323 = vmatmul.bf16.gmra.mxu2 %v687_v36  ;;  %1372 = vmatmul.bf16.gmra.mxu3 %v687_v36  ;;  %v929_v41 = vpack.c.bf16 %v905_v39, %v903_v37  ;;  %v930_v43 = vpack.c.bf16 %v906_v40, %v904_v38  ;;  %v2696_v36 = vld [vmem:[%s3748_s11 + $0x28] sm:$0xff]  ;;  %v672_v37 = vmax.f32 %v639_v33, 0.0  ;;  %v674_v38 = vmax.f32 %v641_v34, 0.0 }
 0x161   : > { %1874 = vmatpush.bf16.msra.mxu3 %v2696_v36 }
 0x162   : > { %1094 = vmatmul.bf16.gmra.mxu0 %v929_v41  ;;  %1143 = vmatmul.bf16.gmra.mxu1 %v930_v43 }
 0x163   : > { %v822_v8 = vpop.f32.mrf.mxu2  ;;  %v871_v45 = vpop.f32.mrf.mxu3 }
 0x164   : > { %v823_v52 = vadd.f32 %v822_v8, %v3216_v19  ;;  %v872_v53 = vadd.f32 %v871_v45, %v3218_v20  ;;  %v690_v45 = vpack.c.bf16 %v674_v38, %v672_v37 }
 0x165   : > { %1875 = vmatpush.bf16.msra.mxu3 %v2695_v1 }
 0x166   : > { %v907_v15 = vmax.f32 %v823_v52, 0.0  ;;  %v908_v59 = vmax.f32 %v872_v53, 0.0 }
 0x169   : > { %1876 = vmatpush.bf16.msra.mxu3 %v2694_v50 }
 0x16b   : > { %v824_v54 = vpop.f32.mrf.mxu2  ;;  %v873_v55 = vpop.f32.mrf.mxu3 }
 0x16c   : > { %v825_v56 = vadd.f32 %v824_v54, %v3216_v19  ;;  %v874_v57 = vadd.f32 %v873_v55, %v3218_v20  ;;  %v2693_v55 = vld [vmem:[%s3748_s11 + $0x10] sm:$0xff] }
 0x16d   : > { %1877 = vmatpush.bf16.msra.mxu3 %v2693_v55 }
 0x16e   : > { %v909_v60 = vmax.f32 %v825_v56, 0.0  ;;  %v910_v61 = vmax.f32 %v874_v57, 0.0  ;;  %v2692_v56 = vld [vmem:[%s3748_s11 + $0x8] sm:$0xff] }
 0x170   : > { %1328 = vmatmul.bf16.gmra.mxu2 %v688_v58  ;;  %1377 = vmatmul.bf16.gmra.mxu3 %v688_v58  ;;  %v931_v0 = vpack.c.bf16 %v909_v60, %v907_v15  ;;  %v932_v2 = vpack.c.bf16 %v910_v61, %v908_v59  ;;  %v2691_v60 = vld [vmem:[%s3748_s11] sm:$0xff] }
 0x171   : > { %1878 = vmatpush.bf16.msra.mxu3 %v2692_v56  ;;  %v2704_v56 = vld [vmem:[%s3748_s11 + $0x68] sm:$0xff] }
 0x172   : > { %1099 = vmatmul.bf16.gmra.mxu0 %v931_v0  ;;  %1148 = vmatmul.bf16.gmra.mxu1 %v932_v2 }
 0x173   : > { %v827_v4 = vpop.f32.mrf.mxu2  ;;  %v876_v5 = vpop.f32.mrf.mxu3 }
 0x174   : > { %v828_v42 = vadd.f32 %v827_v4, %v3216_v19  ;;  %v877_v14 = vadd.f32 %v876_v5, %v3218_v20 }
 0x175   : > { %1879 = vmatpush.bf16.msra.mxu3 %v2691_v60 }
 0x176   : > { %v911_v23 = vmax.f32 %v828_v42, 0.0  ;;  %v912_v24 = vmax.f32 %v877_v14, 0.0 }
 0x17b   : > { %v829_v16 = vpop.f32.mrf.mxu2  ;;  %v878_v17 = vpop.f32.mrf.mxu3 }
 0x17c   : > { %v830_v18 = vadd.f32 %v829_v16, %v3216_v19  ;;  %v879_v21 = vadd.f32 %v878_v17, %v3218_v20 }
 0x17e   : > { %v913_v25 = vmax.f32 %v830_v18, 0.0  ;;  %v914_v26 = vmax.f32 %v879_v21, 0.0 }
 0x180   : > { %1333 = vmatmul.bf16.gmra.mxu2 %v689_v22  ;;  %1382 = vmatmul.bf16.gmra.mxu3 %v689_v22  ;;  %v933_v28 = vpack.c.bf16 %v913_v25, %v911_v23  ;;  %v934_v62 = vpack.c.bf16 %v914_v26, %v912_v24 }
 0x182   : > { %1104 = vmatmul.bf16.gmra.mxu0 %v933_v28  ;;  %1153 = vmatmul.bf16.gmra.mxu1 %v934_v62  ;;  %v3344_v62 = vld [vmem:[%s3743_s6] ss:$0 sm:$0xff] }
 0x183   : > { %v832_v30 = vpop.f32.mrf.mxu2  ;;  %v881_v31 = vpop.f32.mrf.mxu3 }
 0x184   : > { %v833_v39 = vadd.f32 %v832_v30, %v3216_v19  ;;  %v882_v40 = vadd.f32 %v881_v31, %v3218_v20  ;;  %v2705_v31 = vld [vmem:[%s3748_s11 + $0x70] sm:$0xff] }
 0x186   : > { %v915_v46 = vmax.f32 %v833_v39, 0.0  ;;  %v916_v47 = vmax.f32 %v882_v40, 0.0 }
 0x18b   : > { %v834_v41 = vpop.f32.mrf.mxu2  ;;  %v883_v43 = vpop.f32.mrf.mxu3 }
 0x18c   : > { %v835_v44 = vadd.f32 %v834_v41, %v3216_v19  ;;  %v884_v8 = vadd.f32 %v883_v43, %v3218_v20 }
 0x18e   : > { %v917_v48 = vmax.f32 %v835_v44, 0.0  ;;  %v918_v49 = vmax.f32 %v884_v8, 0.0 }
 0x190   : > { %1338 = vmatmul.bf16.gmra.mxu2 %v690_v45  ;;  %1387 = vmatmul.bf16.gmra.mxu3 %v690_v45  ;;  %v935_v51 = vpack.c.bf16 %v917_v48, %v915_v46  ;;  %v936_v52 = vpack.c.bf16 %v918_v49, %v916_v47 }
 0x192   : > { %1109 = vmatmul.bf16.gmra.mxu0 %v935_v51  ;;  %1158 = vmatmul.bf16.gmra.mxu1 %v936_v52 }
 0x193   : > { %v837_v53 = vpop.f32.mrf.mxu2  ;;  %v886_v54 = vpop.f32.mrf.mxu3 }
 0x194   : > { %v838_v57 = vadd.f32 %v837_v53, %v3216_v19  ;;  %v887_v58 = vadd.f32 %v886_v54, %v3218_v20 }
 0x196   : > { %v919_v0 = vmax.f32 %v838_v57, 0.0  ;;  %v920_v2 = vmax.f32 %v887_v58, 0.0 }
 0x19b   : > { %v839_v15 = vpop.f32.mrf.mxu2  ;;  %v888_v59 = vpop.f32.mrf.mxu3 }
 0x19c   : > { %v840_v61 = vadd.f32 %v839_v15, %v3216_v19  ;;  %v889_v63 = vadd.f32 %v888_v59, %v3218_v20  ;;  %v2706_v19 = vld [vmem:[%s3748_s11 + $0x78] sm:$0xff]  ;;  %v3333_v20 = vperm.slane %v1209_v9, 0 }
 0x19d   : > { %1775 = vmatpush.bf16.msra.mxu2 %v2706_v19 }
 0x19e   : > { %v921_v3 = vmax.f32 %v840_v61, 0.0  ;;  %v922_v4 = vmax.f32 %v889_v63, 0.0 }
 0x1a0   : > { %v937_v5 = vpack.c.bf16 %v921_v3, %v919_v0  ;;  %v938_v13 = vpack.c.bf16 %v922_v4, %v920_v2 }
 0x1a1   : > { %1776 = vmatpush.bf16.msra.mxu2 %v2705_v31 }
 0x1a2   : > { %1114 = vmatmul.bf16.gmra.mxu0 %v937_v5  ;;  %1163 = vmatmul.bf16.gmra.mxu1 %v938_v13 }
 0x1a3   : > { %v1304_v11 = vpop.f32.mrf.mxu2  ;;  %v1353_v12 = vpop.f32.mrf.mxu3 }
 0x1a4   : > { %v1305_v6 = vadd.f32 %v1304_v11, %v3333_v20  ;;  %v1354_v42 = vadd.f32 %v1353_v12, %v3335_v10 }
 0x1a5   : > { %1777 = vmatpush.bf16.msra.mxu2 %v2704_v56 }
 0x1a6   : > { %v1393_v21 = vmax.f32 %v1305_v6, 0.0  ;;  %v1394_v22 = vmax.f32 %v1354_v42, 0.0 }
 0x1ab   : > { %v1306_v14 = vpop.f32.mrf.mxu2  ;;  %v1355_v16 = vpop.f32.mrf.mxu3 }
 0x1ac   : > { %v1307_v17 = vadd.f32 %v1306_v14, %v3333_v20  ;;  %v1356_v18 = vadd.f32 %v1355_v16, %v3335_v10 }
 0x1ae   : > { %v1395_v23 = vmax.f32 %v1307_v17, 0.0  ;;  %v1396_v24 = vmax.f32 %v1356_v18, 0.0 }
 0x1af   : > { %v1080_v25 = vpop.f32.mrf.mxu0  ;;  %v1129_v26 = vpop.f32.mrf.mxu1 }
 0x1b0   : > { %v1425_v27 = vpack.c.bf16 %v1395_v23, %v1393_v21  ;;  %v1426_v28 = vpack.c.bf16 %v1396_v24, %v1394_v22  ;;  %v1081_v30 = vadd.f32 %v3344_v62, %v1080_v25  ;;  %v2703_v23 = vld [vmem:[%s3748_s11 + $0x60] sm:$0xff] }
 0x1b1   : > { %1778 = vmatpush.bf16.msra.mxu2 %v2703_v23 }
 0x1b2   : > { %1581 = vmatmul.bf16.vlgmr.msra.gmra.mxu0 %v1425_v27  ;;  %1630 = vmatmul.bf16.vlgmr.msra.gmra.mxu1 %v1426_v28  ;;  %v1130_v34 = vadd.f32 %v1129_v26, %v1081_v30 }
 0x1b3   : > { %v1309_v29 = vpop.f32.mrf.mxu2  ;;  %v1358_v7 = vpop.f32.mrf.mxu3 }
 0x1b4   : > { %v1310_v36 = vadd.f32 %v1309_v29, %v3333_v20  ;;  %v1359_v37 = vadd.f32 %v1358_v7, %v3335_v10  ;;  %v1169_v41 = vmax.f32 %v1130_v34, 0.0 }
 0x1b6   : > { %v1397_v8 = vmax.f32 %v1310_v36, 0.0  ;;  %v1398_v45 = vmax.f32 %v1359_v37, 0.0 }
 0x1b7   : > { %v1082_v32 = vpop.f32.mrf.mxu0  ;;  %v1131_v33 = vpop.f32.mrf.mxu1 }
 0x1b8   : > { %v1083_v35 = vadd.f32 %v3344_v62, %v1082_v32 }
 0x1ba   : > { %v1132_v38 = vadd.f32 %v1131_v33, %v1083_v35 }
 0x1bb   : > { %v1311_v39 = vpop.f32.mrf.mxu2  ;;  %v1360_v40 = vpop.f32.mrf.mxu3 }
 0x1bc   : > { %v1170_v43 = vmax.f32 %v1132_v38, 0.0  ;;  %v1312_v1 = vadd.f32 %v1311_v39, %v3333_v20  ;;  %v1361_v44 = vadd.f32 %v1360_v40, %v3335_v10 }
 0x1be   : > { %v1185_v46 = vpack.c.bf16 %v1170_v43, %v1169_v41  ;;  %v1399_v47 = vmax.f32 %v1312_v1, 0.0  ;;  %v1400_v48 = vmax.f32 %v1361_v44, 0.0 }
 0x1bf   : > { %v1085_v49 = vpop.f32.mrf.mxu0  ;;  %v1134_v50 = vpop.f32.mrf.mxu1 }
 0x1c0   : > { %1880 = vmatmul.bf16.vlgmr.msra.gmra.mxu3 %v1185_v46  ;;  %v1427_v51 = vpack.c.bf16 %v1399_v47, %v1397_v8  ;;  %v1428_v52 = vpack.c.bf16 %v1400_v48, %v1398_v45  ;;  %v1086_v55 = vadd.f32 %v3344_v62, %v1085_v49  ;;  %v2702_v47 = vld [vmem:[%s3748_s11 + $0x58] sm:$0xff] }
 0x1c1   : > { %1779 = vmatpush.bf16.msra.mxu2 %v2702_v47 }
 0x1c2   : > { %1586 = vmatmul.bf16.gmra.mxu0 %v1427_v51  ;;  %1635 = vmatmul.bf16.gmra.mxu1 %v1428_v52  ;;  %v1135_v15 = vadd.f32 %v1134_v50, %v1086_v55 }
 0x1c3   : > { %v1314_v53 = vpop.f32.mrf.mxu2  ;;  %v1363_v54 = vpop.f32.mrf.mxu3 }
 0x1c4   : > { %v1315_v60 = vadd.f32 %v1314_v53, %v3333_v20  ;;  %v1364_v61 = vadd.f32 %v1363_v54, %v3335_v10  ;;  %v1171_v3 = vmax.f32 %v1135_v15, 0.0 }
 0x1c6   : > { %v1401_v9 = vmax.f32 %v1315_v60, 0.0  ;;  %v1402_v11 = vmax.f32 %v1364_v61, 0.0 }
 0x1c7   : > { %v1087_v57 = vpop.f32.mrf.mxu0  ;;  %v1136_v58 = vpop.f32.mrf.mxu1 }
 0x1c8   : > { %v1088_v59 = vadd.f32 %v3344_v62, %v1087_v57 }
 0x1ca   : > { %v1137_v63 = vadd.f32 %v1136_v58, %v1088_v59 }
 0x1cb   : > { %v1316_v0 = vpop.f32.mrf.mxu2  ;;  %v1365_v2 = vpop.f32.mrf.mxu3 }
 0x1cc   : > { %v1172_v4 = vmax.f32 %v1137_v63, 0.0  ;;  %v1317_v5 = vadd.f32 %v1316_v0, %v3333_v20  ;;  %v1366_v13 = vadd.f32 %v1365_v2, %v3335_v10 }
 0x1ce   : > { %v1403_v12 = vmax.f32 %v1317_v5, 0.0  ;;  %v1404_v19 = vmax.f32 %v1366_v13, 0.0  ;;  %v1186_v6 = vpack.c.bf16 %v1172_v4, %v1171_v3 }
 0x1cf   : > { %v1090_v42 = vpop.f32.mrf.mxu0  ;;  %v1139_v14 = vpop.f32.mrf.mxu1 }
 0x1d0   : > { %1885 = vmatmul.bf16.gmra.mxu3 %v1186_v6  ;;  %v1429_v16 = vpack.c.bf16 %v1403_v12, %v1401_v9  ;;  %v1430_v17 = vpack.c.bf16 %v1404_v19, %v1402_v11  ;;  %v1091_v22 = vadd.f32 %v3344_v62, %v1090_v42  ;;  %v2701_v19 = vld [vmem:[%s3748_s11 + $0x50] sm:$0xff] }
 0x1d1   : > { %1780 = vmatpush.bf16.msra.mxu2 %v2701_v19 }
 0x1d2   : > { %1591 = vmatmul.bf16.gmra.mxu0 %v1429_v16  ;;  %1640 = vmatmul.bf16.gmra.mxu1 %v1430_v17  ;;  %v1140_v26 = vadd.f32 %v1139_v14, %v1091_v22 }
 0x1d3   : > { %v1319_v18 = vpop.f32.mrf.mxu2  ;;  %v1368_v21 = vpop.f32.mrf.mxu3 }
 0x1d4   : > { %v1320_v28 = vadd.f32 %v1319_v18, %v3333_v20  ;;  %v1369_v29 = vadd.f32 %v1368_v21, %v3335_v10  ;;  %v1173_v32 = vmax.f32 %v1140_v26, 0.0 }
 0x1d6   : > { %v1405_v36 = vmax.f32 %v1320_v28, 0.0  ;;  %v1406_v37 = vmax.f32 %v1369_v29, 0.0 }
 0x1d7   : > { %v1092_v24 = vpop.f32.mrf.mxu0  ;;  %v1141_v25 = vpop.f32.mrf.mxu1 }
 0x1d8   : > { %v1093_v27 = vadd.f32 %v3344_v62, %v1092_v24 }
 0x1da   : > { %v1142_v7 = vadd.f32 %v1141_v25, %v1093_v27 }
 0x1db   : > { %v1321_v30 = vpop.f32.mrf.mxu2  ;;  %v1370_v31 = vpop.f32.mrf.mxu3 }
 0x1dc   : > { %v1174_v33 = vmax.f32 %v1142_v7, 0.0  ;;  %v1322_v34 = vadd.f32 %v1321_v30, %v3333_v20  ;;  %v1371_v35 = vadd.f32 %v1370_v31, %v3335_v10 }
 0x1de   : > { %v1407_v38 = vmax.f32 %v1322_v34, 0.0  ;;  %v1408_v39 = vmax.f32 %v1371_v35, 0.0  ;;  %v1187_v40 = vpack.c.bf16 %v1174_v33, %v1173_v32 }
 0x1df   : > { %v1095_v41 = vpop.f32.mrf.mxu0  ;;  %v1144_v43 = vpop.f32.mrf.mxu1 }
 0x1e0   : > { %1890 = vmatmul.bf16.gmra.mxu3 %v1187_v40  ;;  %v1431_v1 = vpack.c.bf16 %v1407_v38, %v1405_v36  ;;  %v1432_v44 = vpack.c.bf16 %v1408_v39, %v1406_v37  ;;  %v1096_v46 = vadd.f32 %v3344_v62, %v1095_v41  ;;  %v2700_v39 = vld [vmem:[%s3748_s11 + $0x48] sm:$0xff] }
 0x1e1   : > { %1781 = vmatpush.bf16.msra.mxu2 %v2700_v39 }
 0x1e2   : > { %1596 = vmatmul.bf16.gmra.mxu0 %v1431_v1  ;;  %1645 = vmatmul.bf16.gmra.mxu1 %v1432_v44  ;;  %v1145_v50 = vadd.f32 %v1144_v43, %v1096_v46 }
 0x1e3   : > { %v1324_v8 = vpop.f32.mrf.mxu2  ;;  %v1373_v45 = vpop.f32.mrf.mxu3 }
 0x1e4   : > { %v1325_v52 = vadd.f32 %v1324_v8, %v3333_v20  ;;  %v1374_v53 = vadd.f32 %v1373_v45, %v3335_v10  ;;  %v1175_v57 = vmax.f32 %v1145_v50, 0.0 }
 0x1e6   : > { %v1409_v60 = vmax.f32 %v1325_v52, 0.0  ;;  %v1410_v61 = vmax.f32 %v1374_v53, 0.0 }
 0x1e7   : > { %v1097_v48 = vpop.f32.mrf.mxu0  ;;  %v1146_v49 = vpop.f32.mrf.mxu1 }
 0x1e8   : > { %v1098_v51 = vadd.f32 %v3344_v62, %v1097_v48 }
 0x1ea   : > { %v1147_v54 = vadd.f32 %v1146_v49, %v1098_v51 }
 0x1eb   : > { %v1326_v55 = vpop.f32.mrf.mxu2  ;;  %v1375_v56 = vpop.f32.mrf.mxu3 }
 0x1ec   : > { %v1176_v58 = vmax.f32 %v1147_v54, 0.0  ;;  %v1327_v15 = vadd.f32 %v1326_v55, %v3333_v20  ;;  %v1376_v59 = vadd.f32 %v1375_v56, %v3335_v10 }
 0x1ee   : > { %v1411_v63 = vmax.f32 %v1327_v15, 0.0  ;;  %v1412_v0 = vmax.f32 %v1376_v59, 0.0  ;;  %v1188_v2 = vpack.c.bf16 %v1176_v58, %v1175_v57 }
 0x1ef   : > { %v1100_v3 = vpop.f32.mrf.mxu0  ;;  %v1149_v4 = vpop.f32.mrf.mxu1 }
 0x1f0   : > { %v1433_v5 = vpack.c.bf16 %v1411_v63, %v1409_v60  ;;  %v1434_v13 = vpack.c.bf16 %v1412_v0, %v1410_v61  ;;  %1895 = vmatmul.bf16.gmra.mxu3 %v1188_v2  ;;  %v1101_v12 = vadd.f32 %v3344_v62, %v1100_v3  ;;  %v2699_v0 = vld [vmem:[%s3748_s11 + $0x40] sm:$0xff] }
 0x1f1   : > { %1782 = vmatpush.bf16.msra.mxu2 %v2699_v0 }
 0x1f2   : > { %1601 = vmatmul.bf16.gmra.mxu0 %v1433_v5  ;;  %1650 = vmatmul.bf16.gmra.mxu1 %v1434_v13  ;;  %v1150_v14 = vadd.f32 %v1149_v4, %v1101_v12 }
 0x1f3   : > { %v1329_v9 = vpop.f32.mrf.mxu2  ;;  %v1378_v11 = vpop.f32.mrf.mxu3 }
 0x1f4   : > { %v1330_v17 = vadd.f32 %v1329_v9, %v3333_v20  ;;  %v1379_v18 = vadd.f32 %v1378_v11, %v3335_v10  ;;  %v1177_v24 = vmax.f32 %v1150_v14, 0.0 }
 0x1f6   : > { %v1413_v28 = vmax.f32 %v1330_v17, 0.0  ;;  %v1414_v29 = vmax.f32 %v1379_v18, 0.0 }
 0x1f7   : > { %v1102_v6 = vpop.f32.mrf.mxu0  ;;  %v1151_v42 = vpop.f32.mrf.mxu1 }
 0x1f8   : > { %v1103_v16 = vadd.f32 %v3344_v62, %v1102_v6 }
 0x1fa   : > { %v1152_v21 = vadd.f32 %v1151_v42, %v1103_v16 }
 0x1fb   : > { %v1331_v22 = vpop.f32.mrf.mxu2  ;;  %v1380_v23 = vpop.f32.mrf.mxu3 }
 0x1fc   : > { %v1178_v25 = vmax.f32 %v1152_v21, 0.0  ;;  %v1332_v26 = vadd.f32 %v1331_v22, %v3333_v20  ;;  %v1381_v27 = vadd.f32 %v1380_v23, %v3335_v10 }
 0x1fe   : > { %v1189_v7 = vpack.c.bf16 %v1178_v25, %v1177_v24  ;;  %v1415_v30 = vmax.f32 %v1332_v26, 0.0  ;;  %v1416_v31 = vmax.f32 %v1381_v27, 0.0 }
 0x1ff   : > { %v1105_v32 = vpop.f32.mrf.mxu0  ;;  %v1154_v33 = vpop.f32.mrf.mxu1 }
 0x200   : > { %v1435_v34 = vpack.c.bf16 %v1415_v30, %v1413_v28  ;;  %v1436_v35 = vpack.c.bf16 %v1416_v31, %v1414_v29  ;;  %1900 = vmatmul.bf16.gmra.mxu3 %v1189_v7  ;;  %v1106_v38 = vadd.f32 %v3344_v62, %v1105_v32 }
 0x202   : > { %1606 = vmatmul.bf16.gmra.mxu0 %v1435_v34  ;;  %1655 = vmatmul.bf16.gmra.mxu1 %v1436_v35  ;;  %v1155_v43 = vadd.f32 %v1154_v33, %v1106_v38 }
 0x203   : > { %v1334_v36 = vpop.f32.mrf.mxu2  ;;  %v1383_v37 = vpop.f32.mrf.mxu3 }
 0x204   : > { %v1335_v44 = vadd.f32 %v1334_v36, %v3333_v20  ;;  %v1384_v8 = vadd.f32 %v1383_v37, %v3335_v10  ;;  %v1179_v48 = vmax.f32 %v1155_v43, 0.0  ;;  %v3414_v36 = vld [vmem:[%s3747_s10] ss:$0 sm:$0xff] }
 0x206   : > { %v1417_v52 = vmax.f32 %v1335_v44, 0.0  ;;  %v1418_v53 = vmax.f32 %v1384_v8, 0.0 }
 0x207   : > { %v1107_v40 = vpop.f32.mrf.mxu0  ;;  %v1156_v41 = vpop.f32.mrf.mxu1 }
 0x208   : > { %v1108_v1 = vadd.f32 %v3344_v62, %v1107_v40 }
 0x20a   : > { %v1157_v45 = vadd.f32 %v1156_v41, %v1108_v1 }
 0x20b   : > { %v1336_v46 = vpop.f32.mrf.mxu2  ;;  %v1385_v47 = vpop.f32.mrf.mxu3 }
 0x20c   : > { %v1180_v49 = vmax.f32 %v1157_v45, 0.0  ;;  %v1337_v50 = vadd.f32 %v1336_v46, %v3333_v20  ;;  %v1386_v51 = vadd.f32 %v1385_v47, %v3335_v10 }
 0x20e   : > { %v1190_v54 = vpack.c.bf16 %v1180_v49, %v1179_v48  ;;  %v1419_v55 = vmax.f32 %v1337_v50, 0.0  ;;  %v1420_v56 = vmax.f32 %v1386_v51, 0.0 }
 0x20f   : > { %v1110_v57 = vpop.f32.mrf.mxu0  ;;  %v1159_v58 = vpop.f32.mrf.mxu1 }
 0x210   : > { %v1437_v15 = vpack.c.bf16 %v1419_v55, %v1417_v52  ;;  %v1438_v59 = vpack.c.bf16 %v1420_v56, %v1418_v53  ;;  %1905 = vmatmul.bf16.gmra.mxu3 %v1190_v54  ;;  %v1111_v63 = vadd.f32 %v3344_v62, %v1110_v57 }
 0x212   : > { %1611 = vmatmul.bf16.gmra.mxu0 %v1437_v15  ;;  %1660 = vmatmul.bf16.gmra.mxu1 %v1438_v59  ;;  %v1160_v4 = vadd.f32 %v1159_v58, %v1111_v63 }
 0x213   : > { %v1339_v60 = vpop.f32.mrf.mxu2  ;;  %v1388_v61 = vpop.f32.mrf.mxu3 }
 0x214   : > { %v1340_v13 = vadd.f32 %v1339_v60, %v3333_v20  ;;  %v1389_v9 = vadd.f32 %v1388_v61, %v3335_v10  ;;  %v1181_v6 = vmax.f32 %v1160_v4, 0.0 }
 0x216   : > { %v1421_v17 = vmax.f32 %v1340_v13, 0.0  ;;  %v1422_v18 = vmax.f32 %v1389_v9, 0.0 }
 0x217   : > { %v1112_v2 = vpop.f32.mrf.mxu0  ;;  %v1161_v3 = vpop.f32.mrf.mxu1 }
 0x218   : > { %v1113_v5 = vadd.f32 %v3344_v62, %v1112_v2 }
 0x21a   : > { %v1162_v11 = vadd.f32 %v1161_v3, %v1113_v5 }
 0x21b   : > { %v1341_v12 = vpop.f32.mrf.mxu2  ;;  %v1390_v19 = vpop.f32.mrf.mxu3 }
 0x21c   : > { %v1182_v42 = vmax.f32 %v1162_v11, 0.0  ;;  %v1342_v14 = vadd.f32 %v1341_v12, %v3333_v20  ;;  %v1391_v16 = vadd.f32 %v1390_v19, %v3335_v10 }
 0x21e   : > { %v1191_v21 = vpack.c.bf16 %v1182_v42, %v1181_v6  ;;  %v1423_v22 = vmax.f32 %v1342_v14, 0.0  ;;  %v1424_v23 = vmax.f32 %v1391_v16, 0.0 }
 0x21f   : > { %v1115_v24 = vpop.f32.mrf.mxu0  ;;  %v1164_v25 = vpop.f32.mrf.mxu1 }
 0x220   : > { %v1439_v26 = vpack.c.bf16 %v1423_v22, %v1421_v17  ;;  %v1440_v27 = vpack.c.bf16 %v1424_v23, %v1422_v18  ;;  %1910 = vmatmul.bf16.gmra.mxu3 %v1191_v21  ;;  %v1116_v28 = vadd.f32 %v3344_v62, %v1115_v24 }
 0x222   : > { %1616 = vmatmul.bf16.gmra.mxu0 %v1439_v26  ;;  %1665 = vmatmul.bf16.gmra.mxu1 %v1440_v27  ;;  %v1165_v30 = vadd.f32 %v1164_v25, %v1116_v28 }
 0x224   : > { %v1183_v31 = vmax.f32 %v1165_v30, 0.0 }
 0x227   : > { %v1117_v29 = vpop.f32.mrf.mxu0  ;;  %v1166_v7 = vpop.f32.mrf.mxu1 }
 0x228   : > { %v1118_v20 = vadd.f32 %v3344_v62, %v1117_v29 }
 0x22a   : > { %v1167_v10 = vadd.f32 %v1166_v7, %v1118_v20 }
 0x22c   : > { %v1184_v32 = vmax.f32 %v1167_v10, 0.0 }
 0x22e   : > { %v1192_v33 = vpack.c.bf16 %v1184_v32, %v1183_v31 }
 0x22f   : > { %v1582_v34 = vpop.f32.mrf.mxu0  ;;  %v1631_v35 = vpop.f32.mrf.mxu1 }
 0x230   : > { %1915 = vmatmul.bf16.gmra.mxu3 %v1192_v33  ;;  %v1583_v37 = vadd.f32 %v3414_v36, %v1582_v34 }
 0x232   : > { %v1632_v40 = vadd.f32 %v1631_v35, %v1583_v37 }
 0x234   : > { %v1671_v43 = vmax.f32 %v1632_v40, 0.0 }
 0x237   : > { %v1584_v38 = vpop.f32.mrf.mxu0  ;;  %v1633_v39 = vpop.f32.mrf.mxu1 }
 0x238   : > { %v1585_v41 = vadd.f32 %v3414_v36, %v1584_v38 }
 0x23a   : > { %v1634_v62 = vadd.f32 %v1633_v39, %v1585_v41 }
 0x23c   : > { %v1672_v1 = vmax.f32 %v1634_v62, 0.0 }
 0x23e   : > { %v1687_v44 = vpack.c.bf16 %v1672_v1, %v1671_v43 }
 0x23f   : > { %v1587_v8 = vpop.f32.mrf.mxu0  ;;  %v1636_v45 = vpop.f32.mrf.mxu1 }
 0x240   : > { %1783 = vmatmul.bf16.vlgmr.msra.gmra.mxu2 %v1687_v44  ;;  %v1588_v46 = vadd.f32 %v3414_v36, %v1587_v8 }
 0x242   : > { %v1637_v49 = vadd.f32 %v1636_v45, %v1588_v46 }
 0x244   : > { %v1673_v52 = vmax.f32 %v1637_v49, 0.0 }
 0x247   : > { %v1589_v47 = vpop.f32.mrf.mxu0  ;;  %v1638_v48 = vpop.f32.mrf.mxu1 }
 0x248   : > { %v1590_v50 = vadd.f32 %v3414_v36, %v1589_v47 }
 0x24a   : > { %v1639_v51 = vadd.f32 %v1638_v48, %v1590_v50  ;;  %v1881_v50 = vpop.f32.mrf.mxu3 }
 0x24c   : > { %v1674_v53 = vmax.f32 %v1639_v51, 0.0 }
 0x24e   : > { %v1688_v54 = vpack.c.bf16 %v1674_v53, %v1673_v52 }
 0x24f   : > { %v1592_v55 = vpop.f32.mrf.mxu0  ;;  %v1641_v56 = vpop.f32.mrf.mxu1 }
 0x250   : > { %1788 = vmatmul.bf16.gmra.mxu2 %v1688_v54  ;;  %v1593_v57 = vadd.f32 %v3414_v36, %v1592_v55 }
 0x252   : > { %v1642_v59 = vadd.f32 %v1641_v56, %v1593_v57 }
 0x254   : > { %v1675_v63 = vmax.f32 %v1642_v59, 0.0 }
 0x257   : > { %v1594_v58 = vpop.f32.mrf.mxu0  ;;  %v1643_v15 = vpop.f32.mrf.mxu1 }
 0x258   : > { %v1595_v60 = vadd.f32 %v3414_v36, %v1594_v58 }
 0x25a   : > { %v1644_v61 = vadd.f32 %v1643_v15, %v1595_v60  ;;  %v1883_v15 = vpop.f32.mrf.mxu3  ;;  %v1941_v60 = vlaneseq }
 0x25c   : > { %v1676_v0 = vmax.f32 %v1644_v61, 0.0  ;;  %v3432_v61 = vand.u32 127, %v1941_v60 }
 0x25e   : > { %v1689_v2 = vpack.c.bf16 %v1676_v0, %v1675_v63  ;;  %v3437_v63 = vld [vmem:[%s3749_s12] ss:$0 sm:$0xff]  ;;  %vm1943_vm2 = vcmp.lt.s32.totalorder %v3432_v61, 4 }
 0x25f   : > { %v1597_v3 = vpop.f32.mrf.mxu0  ;;  %v1646_v4 = vpop.f32.mrf.mxu1 }
 0x260   : > { %1793 = vmatmul.bf16.gmra.mxu2 %v1689_v2  ;;  %v1598_v5 = vadd.f32 %v3414_v36, %v1597_v3 }
 0x262   : > { %v1647_v11 = vadd.f32 %v1646_v4, %v1598_v5  ;;  %v1886_v59 = vpop.f32.mrf.mxu3 }
 0x264   : > { %v1677_v6 = vmax.f32 %v1647_v11, 0.0 }
 0x267   : > { %v1599_v13 = vpop.f32.mrf.mxu0  ;;  %v1648_v9 = vpop.f32.mrf.mxu1 }
 0x268   : > { %v1600_v12 = vadd.f32 %v3414_v36, %v1599_v13 }
 0x26a   : > { %v1649_v19 = vadd.f32 %v1648_v9, %v1600_v12  ;;  %v1888_v0 = vpop.f32.mrf.mxu3 }
 0x26c   : > { %v1678_v42 = vmax.f32 %v1649_v19, 0.0 }
 0x26e   : > { %v1690_v14 = vpack.c.bf16 %v1678_v42, %v1677_v6 }
 0x26f   : > { %v1602_v16 = vpop.f32.mrf.mxu0  ;;  %v1651_v17 = vpop.f32.mrf.mxu1 }
 0x270   : > { %1798 = vmatmul.bf16.gmra.mxu2 %v1690_v14  ;;  %v1603_v18 = vadd.f32 %v3414_v36, %v1602_v16 }
 0x272   : > { %v1652_v23 = vadd.f32 %v1651_v17, %v1603_v18  ;;  %v1891_v9 = vpop.f32.mrf.mxu3 }
 0x274   : > { %v1679_v26 = vmax.f32 %v1652_v23, 0.0 }
 0x277   : > { %v1604_v21 = vpop.f32.mrf.mxu0  ;;  %v1653_v22 = vpop.f32.mrf.mxu1 }
 0x278   : > { %v1605_v24 = vadd.f32 %v3414_v36, %v1604_v21 }
 0x27a   : > { %v1654_v25 = vadd.f32 %v1653_v22, %v1605_v24  ;;  %v1893_v14 = vpop.f32.mrf.mxu3 }
 0x27c   : > { %v1680_v27 = vmax.f32 %v1654_v25, 0.0 }
 0x27e   : > { %v1691_v28 = vpack.c.bf16 %v1680_v27, %v1679_v26 }
 0x27f   : > { %v1607_v29 = vpop.f32.mrf.mxu0  ;;  %v1656_v7 = vpop.f32.mrf.mxu1 }
 0x280   : > { %1803 = vmatmul.bf16.gmra.mxu2 %v1691_v28  ;;  %v1608_v30 = vadd.f32 %v3414_v36, %v1607_v29 }
 0x282   : > { %v1657_v31 = vadd.f32 %v1656_v7, %v1608_v30  ;;  %v1896_v23 = vpop.f32.mrf.mxu3 }
 0x284   : > { %v1681_v34 = vmax.f32 %v1657_v31, 0.0 }
 0x287   : > { %v1609_v20 = vpop.f32.mrf.mxu0  ;;  %v1658_v10 = vpop.f32.mrf.mxu1 }
 0x288   : > { %v1610_v32 = vadd.f32 %v3414_v36, %v1609_v20 }
 0x28a   : > { %v1659_v33 = vadd.f32 %v1658_v10, %v1610_v32  ;;  %v1898_v28 = vpop.f32.mrf.mxu3 }
 0x28c   : > { %v1682_v35 = vmax.f32 %v1659_v33, 0.0 }
 0x28e   : > { %v1692_v37 = vpack.c.bf16 %v1682_v35, %v1681_v34 }
 0x28f   : > { %v1612_v38 = vpop.f32.mrf.mxu0  ;;  %v1661_v39 = vpop.f32.mrf.mxu1 }
 0x290   : > { %1808 = vmatmul.bf16.gmra.mxu2 %v1692_v37  ;;  %v1613_v40 = vadd.f32 %v3414_v36, %v1612_v38 }
 0x292   : > { %v1662_v43 = vadd.f32 %v1661_v39, %v1613_v40  ;;  %v1901_v32 = vpop.f32.mrf.mxu3 }
 0x294   : > { %v1683_v8 = vmax.f32 %v1662_v43, 0.0 }
 0x297   : > { %v1614_v41 = vpop.f32.mrf.mxu0  ;;  %v1663_v62 = vpop.f32.mrf.mxu1 }
 0x298   : > { %v1615_v1 = vadd.f32 %v3414_v36, %v1614_v41 }
 0x29a   : > { %v1664_v44 = vadd.f32 %v1663_v62, %v1615_v1  ;;  %v1903_v39 = vpop.f32.mrf.mxu3 }
 0x29c   : > { %v1684_v45 = vmax.f32 %v1664_v44, 0.0 }
 0x29e   : > { %v1693_v46 = vpack.c.bf16 %v1684_v45, %v1683_v8 }
 0x29f   : > { %v1617_v47 = vpop.f32.mrf.mxu0  ;;  %v1666_v48 = vpop.f32.mrf.mxu1 }
 0x2a0   : > { %1813 = vmatmul.bf16.gmra.mxu2 %v1693_v46  ;;  %v1618_v49 = vadd.f32 %v3414_v36, %v1617_v47 }
 0x2a2   : > { %v1667_v52 = vadd.f32 %v1666_v48, %v1618_v49  ;;  %v1906_v44 = vpop.f32.mrf.mxu3 }
 0x2a4   : > { %v1685_v56 = vmax.f32 %v1667_v52, 0.0 }
 0x2a7   : > { %v1619_v51 = vpop.f32.mrf.mxu0  ;;  %v1668_v54 = vpop.f32.mrf.mxu1 }
 0x2a8   : > { %v1620_v53 = vadd.f32 %v3414_v36, %v1619_v51 }
 0x2aa   : > { %v1669_v55 = vadd.f32 %v1668_v54, %v1620_v53  ;;  %v1908_v48 = vpop.f32.mrf.mxu3 }
 0x2ac   : > { %v1686_v57 = vmax.f32 %v1669_v55, 0.0 }
 0x2ae   : > { %v1694_v58 = vpack.c.bf16 %v1686_v57, %v1685_v56 }
 0x2b0   : > { %1818 = vmatmul.bf16.gmra.mxu2 %v1694_v58 }
 0x2b2   : > { %v1911_v55 = vpop.f32.mrf.mxu3 }
 0x2ba   : > { %v1913_v60 = vpop.f32.mrf.mxu3 }
 0x2c3   : > { %v1784_v2 = vpop.f32.mrf.mxu2 }
 0x2c4   : > { %v1882_v3 = vadd.f32 %v1881_v50, %v1784_v2 }
 0x2c6   : > { %v3441_v36 = vadd.f32 %v3437_v63, %v1882_v3 }
 0x2c8   : > { %v3446_v4 = vsel %vm1943_vm2, %v3441_v36, -inf }
 0x2c9   : > { %1960 = vmax.xlane.f32.xlu0 %v3446_v4 }
 0x2cb   : > { %v1786_v5 = vpop.f32.mrf.mxu2 }
 0x2cc   : > { %v1884_v13 = vadd.f32 %v1883_v15, %v1786_v5 }
 0x2ce   : > { %v3450_v11 = vadd.f32 %v3437_v63, %v1884_v13 }
 0x2d0   : > { %v3455_v12 = vsel %vm1943_vm2, %v3450_v11, -inf }
 0x2d1   : > { %1962 = vmax.xlane.f32.xlu0 %v3455_v12 }
 0x2d3   : > { %v1789_v19 = vpop.f32.mrf.mxu2 }
 0x2d4   : > { %v1887_v6 = vadd.f32 %v1886_v59, %v1789_v19 }
 0x2d6   : > { %v3459_v42 = vadd.f32 %v3437_v63, %v1887_v6 }
 0x2d8   : > { %v3464_v16 = vsel %vm1943_vm2, %v3459_v42, -inf }
 0x2d9   : > { %1964 = vmax.xlane.f32.xlu1 %v3464_v16 }
 0x2db   : > { %v1791_v17 = vpop.f32.mrf.mxu2 }
 0x2dc   : > { %v1889_v18 = vadd.f32 %v1888_v0, %v1791_v17 }
 0x2de   : > { %v3468_v21 = vadd.f32 %v3437_v63, %v1889_v18 }
 0x2e0   : > { %v3473_v22 = vsel %vm1943_vm2, %v3468_v21, -inf }
 0x2e1   : > { %1966 = vmax.xlane.f32.xlu1 %v3473_v22 }
 0x2e3   : > { %v1794_v24 = vpop.f32.mrf.mxu2 }
 0x2e4   : > { %v1892_v25 = vadd.f32 %v1891_v9, %v1794_v24  ;;  %v1916_v9 = vpop.f32.mrf.mxu3 }
 0x2e6   : > { %v3477_v26 = vadd.f32 %v3437_v63, %v1892_v25 }
 0x2e8   : > { %v3482_v27 = vsel %vm1943_vm2, %v3477_v26, -inf }
 0x2e9   : > { %1968 = vmax.xlane.f32.xlu2 %v3482_v27 }
 0x2eb   : > { %v1796_v29 = vpop.f32.mrf.mxu2 }
 0x2ec   : > { %v1894_v7 = vadd.f32 %v1893_v14, %v1796_v29  ;;  %v1918_v18 = vpop.f32.mrf.mxu3 }
 0x2ee   : > { %v3486_v30 = vadd.f32 %v3437_v63, %v1894_v7 }
 0x2f0   : > { %v3491_v20 = vsel %vm1943_vm2, %v3486_v30, -inf }
 0x2f1   : > { %1970 = vmax.xlane.f32.xlu2 %v3491_v20 }
 0x2f3   : > { %v1799_v10 = vpop.f32.mrf.mxu2 }
 0x2f4   : > { %v1897_v31 = vadd.f32 %v1896_v23, %v1799_v10 }
 0x2f6   : > { %v3495_v33 = vadd.f32 %v3437_v63, %v1897_v31 }
 0x2f8   : > { %v3500_v34 = vsel %vm1943_vm2, %v3495_v33, -inf }
 0x2f9   : > { %1972 = vmax.xlane.f32.xlu0 %v3500_v34 }
 0x2fb   : > { %v1801_v35 = vpop.f32.mrf.mxu2 }
 0x2fc   : > { %v1899_v37 = vadd.f32 %v1898_v28, %v1801_v35 }
 0x2fe   : > { %v3504_v38 = vadd.f32 %v3437_v63, %v1899_v37 }
 0x300   : > { %v3509_v40 = vsel %vm1943_vm2, %v3504_v38, -inf }
 0x301   : > { %1974 = vmax.xlane.f32.xlu1 %v3509_v40 }
 0x303   : > { %v1804_v41 = vpop.f32.mrf.mxu2 }
 0x304   : > { %v1902_v62 = vadd.f32 %v1901_v32, %v1804_v41 }
 0x306   : > { %v3513_v43 = vadd.f32 %v3437_v63, %v1902_v62 }
 0x308   : > { %v3518_v1 = vsel %vm1943_vm2, %v3513_v43, -inf }
 0x309   : > { %1976 = vmax.xlane.f32.xlu2 %v3518_v1 }
 0x30b   : > { %v1806_v8 = vpop.f32.mrf.mxu2 }
 0x30c   : > { %v1904_v45 = vadd.f32 %v1903_v39, %v1806_v8 }
 0x30e   : > { %v3522_v46 = vadd.f32 %v3437_v63, %v1904_v45 }
 0x310   : > { %v3527_v47 = vsel %vm1943_vm2, %v3522_v46, -inf }
 0x311   : > { %1978 = vmax.xlane.f32.xlu0 %v3527_v47 }
 0x313   : > { %v1809_v49 = vpop.f32.mrf.mxu2 }
 0x314   : > { %v1907_v50 = vadd.f32 %v1906_v44, %v1809_v49 }
 0x316   : > { %v3531_v51 = vadd.f32 %v3437_v63, %v1907_v50 }
 0x318   : > { %v3536_v52 = vsel %vm1943_vm2, %v3531_v51, -inf }
 0x319   : > { %1980 = vmax.xlane.f32.xlu1 %v3536_v52 }
 0x31b   : > { %v1811_v53 = vpop.f32.mrf.mxu2 }
 0x31c   : > { %v1909_v54 = vadd.f32 %v1908_v48, %v1811_v53 }
 0x31e   : > { %v3540_v56 = vadd.f32 %v3437_v63, %v1909_v54 }
 0x320   : > { %v3545_v57 = vsel %vm1943_vm2, %v3540_v56, -inf }
 0x321   : > { %1982 = vmax.xlane.f32.xlu2 %v3545_v57 }
 0x323   : > { %v1814_v58 = vpop.f32.mrf.mxu2 }
 0x324   : > { %v1912_v15 = vadd.f32 %v1911_v55, %v1814_v58 }
 0x326   : > { %v3549_v59 = vadd.f32 %v3437_v63, %v1912_v15 }
 0x328   : > { %v3554_v0 = vsel %vm1943_vm2, %v3549_v59, -inf }
 0x329   : > { %1984 = vmax.xlane.f32.xlu0 %v3554_v0 }
 0x32b   : > { %v1816_v2 = vpop.f32.mrf.mxu2 }
 0x32c   : > { %v1914_v3 = vadd.f32 %v1913_v60, %v1816_v2 }
 0x32e   : > { %v3558_v5 = vadd.f32 %v3437_v63, %v1914_v3 }
 0x330   : > { %v3563_v13 = vsel %vm1943_vm2, %v3558_v5, -inf }
 0x331   : > { %1986 = vmax.xlane.f32.xlu1 %v3563_v13 }
 0x333   : > { %v1819_v19 = vpop.f32.mrf.mxu2 }
 0x334   : > { %v1917_v6 = vadd.f32 %v1916_v9, %v1819_v19 }
 0x336   : > { %v3567_v14 = vadd.f32 %v3437_v63, %v1917_v6 }
 0x338   : > { %v3572_v17 = vsel %vm1943_vm2, %v3567_v14, -inf }
 0x339   : > { %1988 = vmax.xlane.f32.xlu2 %v3572_v17 }
 0x33b   : > { %v1821_v23 = vpop.f32.mrf.mxu2 }
 0x33c   : > { %v1919_v24 = vadd.f32 %v1918_v18, %v1821_v23  ;;  %v1961_v25 = vpop.xlane.xlu0 %1960 }
 0x33d   : > { %v1992_v28 = vsub.f32 %v3446_v4, %v1961_v25 }
 0x33e   : > { %v3577_v29 = vadd.f32 %v3437_v63, %v1919_v24 }
 0x33f   : > { %v2008_v7 = vmul.f32 1.442695, %v1992_v28 }
 0x340   : > { %v3582_v10 = vsel %vm1943_vm2, %v3577_v29, -inf }
 0x341   : > { %2718 = vpow2.f32 %v2008_v7  ;;  %1990 = vmax.xlane.f32.xlu0 %v3582_v10 }
 0x344   : > { %v1963_v31 = vpop.xlane.xlu0 %1962 }
 0x345   : > { %v1993_v32 = vsub.f32 %v3455_v12, %v1963_v31 }
 0x347   : > { %v3586_v35 = vpop.eup %2718  ;;  %v2010_v37 = vmul.f32 1.442695, %v1993_v32 }
 0x348   : > { %2040 = vadd.xlane.f32.xlu1 %v3586_v35 }
 0x349   : > { %2720 = vpow2.f32 %v2010_v37 }
 0x34c   : > { %v1965_v63 = vpop.xlane.xlu1 %1964 }
 0x34d   : > { %v1994_v4 = vsub.f32 %v3464_v16, %v1965_v63 }
 0x34f   : > { %v3590_v39 = vpop.eup %2720  ;;  %v2012_v41 = vmul.f32 1.442695, %v1994_v4 }
 0x350   : > { %2042 = vadd.xlane.f32.xlu2 %v3590_v39 }
 0x351   : > { %2722 = vpow2.f32 %v2012_v41 }
 0x354   : > { %v1967_v62 = vpop.xlane.xlu1 %1966 }
 0x355   : > { %v1995_v44 = vsub.f32 %v3473_v22, %v1967_v62 }
 0x357   : > { %v3594_v8 = vpop.eup %2722  ;;  %v2014_v12 = vmul.f32 1.442695, %v1995_v44 }
 0x358   : > { %2044 = vadd.xlane.f32.xlu0 %v3594_v8 }
 0x359   : > { %2724 = vpow2.f32 %v2014_v12 }
 0x35c   : > { %v1969_v45 = vpop.xlane.xlu2 %1968 }
 0x35d   : > { %v1996_v48 = vsub.f32 %v3482_v27, %v1969_v45 }
 0x35f   : > { %v3598_v49 = vpop.eup %2724  ;;  %v2016_v16 = vmul.f32 1.442695, %v1996_v48 }
 0x360   : > { %2046 = vadd.xlane.f32.xlu1 %v3598_v49 }
 0x361   : > { %2726 = vpow2.f32 %v2016_v16 }
 0x364   : > { %v1971_v50 = vpop.xlane.xlu2 %1970 }
 0x365   : > { %v1997_v53 = vsub.f32 %v3491_v20, %v1971_v50 }
 0x367   : > { %v3602_v54 = vpop.eup %2726  ;;  %v2018_v22 = vmul.f32 1.442695, %v1997_v53 }
 0x368   : > { %2048 = vadd.xlane.f32.xlu2 %v3602_v54 }
 0x369   : > { %2728 = vpow2.f32 %v2018_v22 }
 0x36c   : > { %v1973_v55 = vpop.xlane.xlu0 %1972 }
 0x36d   : > { %v1998_v58 = vsub.f32 %v3500_v34, %v1973_v55 }
 0x36f   : > { %v3606_v15 = vpop.eup %2728  ;;  %v2020_v27 = vmul.f32 1.442695, %v1998_v58 }
 0x370   : > { %2050 = vadd.xlane.f32.xlu0 %v3606_v15 }
 0x371   : > { %2730 = vpow2.f32 %v2020_v27 }
 0x374   : > { %v1975_v60 = vpop.xlane.xlu1 %1974 }
 0x375   : > { %v1999_v2 = vsub.f32 %v3509_v40, %v1975_v60 }
 0x377   : > { %v3610_v3 = vpop.eup %2730  ;;  %v2022_v20 = vmul.f32 1.442695, %v1999_v2 }
 0x378   : > { %2052 = vadd.xlane.f32.xlu1 %v3610_v3 }
 0x379   : > { %2732 = vpow2.f32 %v2022_v20 }
 0x37c   : > { %v1977_v9 = vpop.xlane.xlu2 %1976 }
 0x37d   : > { %v2000_v19 = vsub.f32 %v3518_v1, %v1977_v9 }
 0x37f   : > { %v3614_v6 = vpop.eup %2732  ;;  %v2024_v34 = vmul.f32 1.442695, %v2000_v19 }
 0x380   : > { %2054 = vadd.xlane.f32.xlu2 %v3614_v6 }
 0x381   : > { %2734 = vpow2.f32 %v2024_v34 }
 0x384   : > { %v1979_v18 = vpop.xlane.xlu0 %1978 }
 0x385   : > { %v2001_v23 = vsub.f32 %v3527_v47, %v1979_v18 }
 0x387   : > { %v3618_v24 = vpop.eup %2734  ;;  %v2026_v40 = vmul.f32 1.442695, %v2001_v23 }
 0x388   : > { %2056 = vadd.xlane.f32.xlu0 %v3618_v24 }
 0x389   : > { %2736 = vpow2.f32 %v2026_v40 }
 0x38c   : > { %v1981_v25 = vpop.xlane.xlu1 %1980 }
 0x38d   : > { %v2002_v28 = vsub.f32 %v3536_v52, %v1981_v25 }
 0x38f   : > { %v3622_v7 = vpop.eup %2736  ;;  %v2028_v1 = vmul.f32 1.442695, %v2002_v28 }
 0x390   : > { %2058 = vadd.xlane.f32.xlu1 %v3622_v7 }
 0x391   : > { %2738 = vpow2.f32 %v2028_v1 }
 0x394   : > { %v1983_v31 = vpop.xlane.xlu2 %1982 }
 0x395   : > { %v2003_v32 = vsub.f32 %v3545_v57, %v1983_v31 }
 0x397   : > { %v3626_v37 = vpop.eup %2738  ;;  %v2030_v47 = vmul.f32 1.442695, %v2003_v32 }
 0x398   : > { %2060 = vadd.xlane.f32.xlu2 %v3626_v37 }
 0x399   : > { %2740 = vpow2.f32 %v2030_v47 }
 0x39c   : > { %v1985_v63 = vpop.xlane.xlu0 %1984 }
 0x39d   : > { %v2004_v4 = vsub.f32 %v3554_v0, %v1985_v63 }
 0x39f   : > { %v3630_v41 = vpop.eup %2740  ;;  %v2032_v52 = vmul.f32 1.442695, %v2004_v4 }
 0x3a0   : > { %2062 = vadd.xlane.f32.xlu0 %v3630_v41 }
 0x3a1   : > { %2742 = vpow2.f32 %v2032_v52 }
 0x3a4   : > { %v1987_v62 = vpop.xlane.xlu1 %1986 }
 0x3a5   : > { %v2005_v44 = vsub.f32 %v3563_v13, %v1987_v62 }
 0x3a7   : > { %v3634_v12 = vpop.eup %2742  ;;  %v2034_v57 = vmul.f32 1.442695, %v2005_v44 }
 0x3a8   : > { %2064 = vadd.xlane.f32.xlu1 %v3634_v12 }
 0x3a9   : > { %2744 = vpow2.f32 %v2034_v57 }
 0x3ac   : > { %v1989_v45 = vpop.xlane.xlu2 %1988 }
 0x3ad   : > { %v2006_v48 = vsub.f32 %v3572_v17, %v1989_v45 }
 0x3af   : > { %v3638_v16 = vpop.eup %2744  ;;  %v2036_v0 = vmul.f32 1.442695, %v2006_v48 }
 0x3b0   : > { %2066 = vadd.xlane.f32.xlu2 %v3638_v16 }
 0x3b1   : > { %2746 = vpow2.f32 %v2036_v0 }
 0x3b4   : > { %v1991_v50 = vpop.xlane.xlu0 %1990 }
 0x3b5   : > { %v2007_v53 = vsub.f32 %v3582_v10, %v1991_v50 }
 0x3b7   : > { %v3642_v13 = vpop.eup %2746  ;;  %v2038_v22 = vmul.f32 1.442695, %v2007_v53 }
 0x3b8   : > { %2068 = vadd.xlane.f32.xlu0 %v3642_v13 }
 0x3b9   : > { %2748 = vpow2.f32 %v2038_v22 }
 0x3bb   : > { %v2041_v55 = vpop.xlane.xlu1 %2040 }
 0x3bc   : > { %2750 = vrcp.f32 %v2041_v55 }
 0x3bf   : > { %v3645_v58 = vpop.eup %2748 }
 0x3c0   : > { %2070 = vadd.xlane.f32.xlu1 %v3645_v58 }
 0x3c2   : > { %v2751_v17 = vpop.eup %2750 }
 0x3c3   : > { %v2088_v27 = vmul.f32 %v2751_v17, %v2041_v55  ;;  %v2043_v60 = vpop.xlane.xlu2 %2042 }
 0x3c4   : > { %2752 = vrcp.f32 %v2043_v60 }
 0x3c5   : > { %v2104_v2 = vsub.f32 2.0, %v2088_v27 }
 0x3c7   : > { %v2120_v20 = vmul.f32 %v2751_v17, %v2104_v2 }
 0x3c9   : > { %v2136_v10 = vmul.f32 %v3586_v35, %v2120_v20 }
 0x3ca   : > { %v2753_v9 = vpop.eup %2752 }
 0x3cb   : > { %v2152_v19 = vsel %vm1943_vm2, %v2136_v10, %v3441_v36  ;;  %v2089_v34 = vmul.f32 %v2753_v9, %v2043_v60  ;;  %v2045_v18 = vpop.xlane.xlu0 %2044 }
 0x3cc   : > { %2168 = vst [vmem:[%s3652_s20] sm:$0xff] %v2152_v19  ;;  %2754 = vrcp.f32 %v2045_v18 }
 0x3cd   : > { %v2105_v23 = vsub.f32 2.0, %v2089_v34 }
 0x3cf   : > { %v2121_v40 = vmul.f32 %v2753_v9, %v2105_v23 }
 0x3d1   : > { %v2137_v25 = vmul.f32 %v3590_v39, %v2121_v40 }
 0x3d2   : > { %v2755_v28 = vpop.eup %2754 }
 0x3d3   : > { %v2153_v1 = vsel %vm1943_vm2, %v2137_v25, %v3450_v11  ;;  %v2090_v35 = vmul.f32 %v2755_v28, %v2045_v18  ;;  %v2047_v31 = vpop.xlane.xlu1 %2046 }
 0x3d4   : > { %2169 = vst [vmem:[%s3652_s20 + $0x8] sm:$0xff] %v2153_v1  ;;  %2756 = vrcp.f32 %v2047_v31 }
 0x3d5   : > { %v2106_v32 = vsub.f32 2.0, %v2090_v35 }
 0x3d7   : > { %v2122_v36 = vmul.f32 %v2755_v28, %v2106_v32 }
 0x3d9   : > { %v2138_v47 = vmul.f32 %v3594_v8, %v2122_v36 }
 0x3da   : > { %v2757_v63 = vpop.eup %2756 }
 0x3db   : > { %v2154_v4 = vsel %vm1943_vm2, %v2138_v47, %v3459_v42  ;;  %v2091_v39 = vmul.f32 %v2757_v63, %v2047_v31  ;;  %v2049_v52 = vpop.xlane.xlu2 %2048 }
 0x3dc   : > { %2170 = vst [vmem:[%s3652_s20 + $0x10] sm:$0xff] %v2154_v4  ;;  %2758 = vrcp.f32 %v2049_v52 }
 0x3dd   : > { %v2107_v62 = vsub.f32 2.0, %v2091_v39 }
 0x3df   : > { %v2123_v11 = vmul.f32 %v2757_v63, %v2107_v62 }
 0x3e1   : > { %v2139_v44 = vmul.f32 %v3598_v49, %v2123_v11 }
 0x3e2   : > { %v2759_v57 = vpop.eup %2758 }
 0x3e3   : > { %v2155_v45 = vsel %vm1943_vm2, %v2139_v44, %v3468_v21  ;;  %v2092_v8 = vmul.f32 %v2759_v57, %v2049_v52  ;;  %v2051_v48 = vpop.xlane.xlu0 %2050 }
 0x3e4   : > { %2171 = vst [vmem:[%s3652_s20 + $0x18] sm:$0xff] %v2155_v45  ;;  %2760 = vrcp.f32 %v2051_v48 }
 0x3e5   : > { %v2108_v0 = vsub.f32 2.0, %v2092_v8 }
 0x3e7   : > { %v2124_v42 = vmul.f32 %v2759_v57, %v2108_v0 }
 0x3e9   : > { %v2140_v50 = vmul.f32 %v3602_v54, %v2124_v42 }
 0x3ea   : > { %v2761_v53 = vpop.eup %2760 }
 0x3eb   : > { %v2156_v22 = vsel %vm1943_vm2, %v2140_v50, %v3477_v26  ;;  %v2093_v49 = vmul.f32 %v2761_v53, %v2051_v48  ;;  %v2053_v55 = vpop.xlane.xlu1 %2052 }
 0x3ec   : > { %2172 = vst [vmem:[%s3652_s20 + $0x20] sm:$0xff] %v2156_v22  ;;  %2762 = vrcp.f32 %v2053_v55 }
 0x3ed   : > { %v2109_v17 = vsub.f32 2.0, %v2093_v49 }
 0x3ef   : > { %v2125_v21 = vmul.f32 %v2761_v53, %v2109_v17 }
 0x3f1   : > { %v2141_v27 = vmul.f32 %v3606_v15, %v2125_v21 }
 0x3f2   : > { %v2763_v60 = vpop.eup %2762 }
 0x3f3   : > { %v2157_v2 = vsel %vm1943_vm2, %v2141_v27, %v3486_v30  ;;  %v2094_v54 = vmul.f32 %v2763_v60, %v2053_v55  ;;  %v2055_v20 = vpop.xlane.xlu2 %2054 }
 0x3f4   : > { %2173 = vst [vmem:[%s3652_s20 + $0x28] sm:$0xff] %v2157_v2  ;;  %2764 = vrcp.f32 %v2055_v20 }
 0x3f5   : > { %v2110_v10 = vsub.f32 2.0, %v2094_v54 }
 0x3f7   : > { %v2126_v26 = vmul.f32 %v2763_v60, %v2110_v10 }
 0x3f9   : > { %v2142_v9 = vmul.f32 %v3610_v3, %v2126_v26 }
 0x3fa   : > { %v2765_v19 = vpop.eup %2764 }
 0x3fb   : > { %v2158_v34 = vsel %vm1943_vm2, %v2142_v9, %v3495_v33  ;;  %v2095_v15 = vmul.f32 %v2765_v19, %v2055_v20  ;;  %v2057_v18 = vpop.xlane.xlu0 %2056 }
 0x3fc   : > { %2174 = vst [vmem:[%s3652_s20 + $0x30] sm:$0xff] %v2158_v34  ;;  %2766 = vrcp.f32 %v2057_v18 }
 0x3fd   : > { %v2111_v23 = vsub.f32 2.0, %v2095_v15 }
 0x3ff   : > { %v2127_v30 = vmul.f32 %v2765_v19, %v2111_v23 }
 0x401   : > { %v2143_v40 = vmul.f32 %v3614_v6, %v2127_v30 }
 0x402   : > { %v2767_v25 = vpop.eup %2766 }
 0x403   : > { %v2159_v28 = vsel %vm1943_vm2, %v2143_v40, %v3504_v38  ;;  %v2096_v3 = vmul.f32 %v2767_v25, %v2057_v18  ;;  %v2059_v1 = vpop.xlane.xlu1 %2058 }
 0x404   : > { %2175 = vst [vmem:[%s3652_s20 + $0x38] sm:$0xff] %v2159_v28  ;;  %2768 = vrcp.f32 %v2059_v1 }
 0x405   : > { %v2112_v35 = vsub.f32 2.0, %v2096_v3 }
 0x407   : > { %v2128_v33 = vmul.f32 %v2767_v25, %v2112_v35 }
 0x409   : > { %v2144_v31 = vmul.f32 %v3618_v24, %v2128_v33 }
 0x40a   : > { %v2769_v32 = vpop.eup %2768 }
 0x40b   : > { %v2160_v36 = vsel %vm1943_vm2, %v2144_v31, %v3513_v43  ;;  %v2097_v6 = vmul.f32 %v2769_v32, %v2059_v1  ;;  %v2061_v47 = vpop.xlane.xlu2 %2060 }
 0x40c   : > { %2176 = vst [vmem:[%s3652_s20 + $0x40] sm:$0xff] %v2160_v36  ;;  %2770 = vrcp.f32 %v2061_v47 }
 0x40d   : > { %v2113_v63 = vsub.f32 2.0, %v2097_v6 }
 0x40f   : > { %v2129_v38 = vmul.f32 %v2769_v32, %v2113_v63 }
 0x411   : > { %v2145_v4 = vmul.f32 %v3622_v7, %v2129_v38 }
 0x412   : > { %v2771_v39 = vpop.eup %2770 }
 0x413   : > { %v2161_v52 = vsel %vm1943_vm2, %v2145_v4, %v3522_v46  ;;  %v2098_v24 = vmul.f32 %v2771_v39, %v2061_v47  ;;  %v2063_v62 = vpop.xlane.xlu0 %2062 }
 0x414   : > { %2177 = vst [vmem:[%s3652_s20 + $0x48] sm:$0xff] %v2161_v52  ;;  %2772 = vrcp.f32 %v2063_v62 }
 0x415   : > { %v2114_v11 = vsub.f32 2.0, %v2098_v24 }
 0x417   : > { %v2130_v43 = vmul.f32 %v2771_v39, %v2114_v11 }
 0x419   : > { %v2146_v44 = vmul.f32 %v3626_v37, %v2130_v43 }
 0x41a   : > { %v2773_v57 = vpop.eup %2772 }
 0x41b   : > { %v2162_v45 = vsel %vm1943_vm2, %v2146_v44, %v3531_v51  ;;  %v2099_v7 = vmul.f32 %v2773_v57, %v2063_v62  ;;  %v2065_v8 = vpop.xlane.xlu1 %2064 }
 0x41c   : > { %2178 = vst [vmem:[%s3652_s20 + $0x50] sm:$0xff] %v2162_v45  ;;  %2774 = vrcp.f32 %v2065_v8 }
 0x41d   : > { %v2115_v48 = vsub.f32 2.0, %v2099_v7 }
 0x41f   : > { %v2131_v46 = vmul.f32 %v2773_v57, %v2115_v48 }
 0x421   : > { %v2147_v0 = vmul.f32 %v3630_v41, %v2131_v46 }
 0x422   : > { %v2775_v42 = vpop.eup %2774 }
 0x423   : > { %v2163_v50 = vsel %vm1943_vm2, %v2147_v0, %v3540_v56  ;;  %v2100_v37 = vmul.f32 %v2775_v42, %v2065_v8  ;;  %v2067_v53 = vpop.xlane.xlu2 %2066 }
 0x424   : > { %2179 = vst [vmem:[%s3652_s20 + $0x58] sm:$0xff] %v2163_v50  ;;  %2776 = vrcp.f32 %v2067_v53 }
 0x425   : > { %v2116_v22 = vsub.f32 2.0, %v2100_v37 }
 0x427   : > { %v2132_v51 = vmul.f32 %v2775_v42, %v2116_v22 }
 0x429   : > { %v2148_v49 = vmul.f32 %v3634_v12, %v2132_v51 }
 0x42a   : > { %v2777_v55 = vpop.eup %2776 }
 0x42b   : > { %v2164_v17 = vsel %vm1943_vm2, %v2148_v49, %v3549_v59  ;;  %v2101_v41 = vmul.f32 %v2777_v55, %v2067_v53  ;;  %v2069_v21 = vpop.xlane.xlu0 %2068 }
 0x42c   : > { %2180 = vst [vmem:[%s3652_s20 + $0x60] sm:$0xff] %v2164_v17  ;;  %2778 = vrcp.f32 %v2069_v21 }
 0x42d   : > { %v2117_v56 = vsub.f32 2.0, %v2101_v41 }
 0x42f   : > { %v2133_v27 = vmul.f32 %v2777_v55, %v2117_v56 }
 0x431   : > { %v2149_v60 = vmul.f32 %v3638_v16, %v2133_v27 }
 0x432   : > { %v2779_v2 = vpop.eup %2778 }
 0x433   : > { %v2165_v54 = vsel %vm1943_vm2, %v2149_v60, %v3558_v5  ;;  %v2102_v12 = vmul.f32 %v2779_v2, %v2069_v21  ;;  %v2071_v20 = vpop.xlane.xlu1 %2070 }
 0x434   : > { %2181 = vst [vmem:[%s3652_s20 + $0x68] sm:$0xff] %v2165_v54  ;;  %2780 = vrcp.f32 %v2071_v20 }
 0x435   : > { %v2118_v59 = vsub.f32 2.0, %v2102_v12 }
 0x437   : > { %v2134_v10 = vmul.f32 %v2779_v2, %v2118_v59 }
 0x439   : > { %v2150_v26 = vmul.f32 %v3642_v13, %v2134_v10 }
 0x43a   : > { %v2781_v9 = vpop.eup %2780 }
 0x43b   : > { %v2166_v19 = vsel %vm1943_vm2, %v2150_v26, %v3567_v14  ;;  %v2103_v16 = vmul.f32 %v2781_v9, %v2071_v20 }
 0x43c   : > { %2182 = vst [vmem:[%s3652_s20 + $0x70] sm:$0xff] %v2166_v19 }
 0x43d   : > { %v2119_v34 = vsub.f32 2.0, %v2103_v16 }
 0x43f   : > { %v2135_v15 = vmul.f32 %v2781_v9, %v2119_v34 }
 0x441   : > { %v2151_v5 = vmul.f32 %v3645_v58, %v2135_v15 }
 0x443   : > { %v2167_v18 = vsel %vm1943_vm2, %v2151_v5, %v3577_v29 }
 0x444   : > { %2183 = vst [vmem:[%s3652_s20 + $0x78] sm:$0xff] %v2167_v18 }
 0x445 PF: > { %s23_s25 = sadd.s32 1, %s2788_s25  }
 0x446   : > { %p20_p4 = scmp.ge.s32.totalorder %s23_s25, 4  }
 0x448   :  { %22 = sbr.rel (!%p20_p4) target bundleno = 1 (0x1), region = 102 }

</bundles_post_ra>
